<compile_context>
chip_gen: v7x
topology: tpu7x:2x2x1
jax: 0.10.0
libtpu: 0.0.40
codegen_flags: <defaults>
</compile_context>

<pallas_src>
import jax
import jax.numpy as jnp
from jax import lax
from jax.experimental import pallas as pl
from jax.experimental.pallas import tpu as pltpu
from functools import partial

PREC = lax.Precision.HIGHEST


# ------------------------------ fused MHA kernel ------------------------------

def _mha_fused_kernel(*refs, num_heads, head_size, batch, has_mask):
    # refs (has_mask=True):  x_ref, wqkv_ref, wp_ref, bp_ref, bias_ref, o_ref
    # refs (has_mask=False): x_ref, wqkv_ref, wp_ref, bp_ref, o_ref
    #   x_ref    : (B, T, C)        whole input (single grid step)
    #   wqkv_ref : (H, C, 3*hs)     per-head [Wq*scale | Wk | Wv], pre-transposed
    #   wp_ref   : (H, hs, C)       projection weight reshaped per head
    #   bp_ref   : (1, C)           projection bias
    #   bias_ref : (T, T) f32       additive mask bias (0 keep / -1e30 masked)
    #   o_ref    : (B, T, C)        final output
    if has_mask:
        x_ref, wqkv_ref, wp_ref, bp_ref, bias_ref, o_ref = refs
    else:
        x_ref, wqkv_ref, wp_ref, bp_ref, o_ref = refs
        bias_ref = None

    H, hs, B = num_heads, head_size, batch
    T, C = x_ref.shape[1], x_ref.shape[2]

    wqkv = wqkv_ref[...]                                   # (H, C, 3*hs)
    wp = wp_ref[...]                                       # (H, hs, C)
    bp = bp_ref[...]                                       # (1, C)
    bias = bias_ref[...][None, :, :] if has_mask else None  # (1, T, T), hoisted

    for b in range(B):  # static unroll; B is small
        xb = x_ref[b]                                      # (T, C)
        xh = jnp.broadcast_to(xb[None, :, :], (H, T, C))   # (H, T, C)

        # Head-batched fused QKV projection (q columns pre-scaled in wrapper).
        qkv = jnp.einsum('htc,hcd->htd', xh, wqkv,
                         precision=PREC,
                         preferred_element_type=jnp.float32)   # (H, T, 3*hs)
        q = qkv[..., :hs]                                      # (H, T, hs)
        k = qkv[..., hs:2 * hs]                                # (H, T, hs)
        v = qkv[..., 2 * hs:]                                  # (H, T, hs)

        # One batched q @ k^T over all heads.
        att = jnp.einsum('hts,hus->htu', q, k,
                         precision=PREC,
                         preferred_element_type=jnp.float32)   # (H, T, T)
        if bias is not None:
            att = att + bias

        # Numerically stable softmax (exact divide), one chain for all heads.
        m = jnp.max(att, axis=-1, keepdims=True)
        p = jnp.exp(att - m)
        p = p / jnp.sum(p, axis=-1, keepdims=True)

        head_out = jnp.einsum('htu,hus->hts', p, v,
                              precision=PREC,
                              preferred_element_type=jnp.float32)  # (H, T, hs)

        # Output projection with the head-concat folded into the contraction
        # (no lane concat, no (T, H*hs) intermediate); dropout identity in eval.
        y = jnp.einsum('hts,hsc->htc', head_out, wp,
                       precision=PREC,
                       preferred_element_type=jnp.float32).sum(axis=0)  # (T, C)
        o_ref[b] = (y + bp).astype(o_ref.dtype)


# ---------------------------------- wrapper -----------------------------------

def multi_head_attention(x, wq, wk, wv, wp, bp, mask=None):
    """x: (B, T, C); wq/wk/wv: (H, hs, C); wp: (C, H*hs); bp: (C,); mask: (T,T) or None."""
    B, T, C = x.shape
    H, hs, _ = wq.shape
    scale = hs ** (-0.5)

    # Per-head stacked, pre-transposed QKV weight: (H, C, 3*hs).
    # The softmax scale is folded into the Q columns (exact in f32).
    wqkv = jnp.concatenate(
        [jnp.transpose(wq, (0, 2, 1)) * scale,    # (H, C, hs)
         jnp.transpose(wk, (0, 2, 1)),
         jnp.transpose(wv, (0, 2, 1))],
        axis=-1)                                   # (H, C, 3*hs)

    # Projection weight laid out so the head/hs contraction replaces the concat.
    wp_r = wp.reshape(C, H, hs).transpose(1, 2, 0)  # (H, hs, C)
    bp2 = bp.reshape(1, C)

    has_mask = mask is not None
    inputs = [x, wqkv, wp_r, bp2]
    in_specs = [
        pl.BlockSpec((B, T, C), lambda i: (0, 0, 0)),        # x (whole array)
        pl.BlockSpec((H, C, 3 * hs), lambda i: (0, 0, 0)),   # fused QKV weight
        pl.BlockSpec((H, hs, C), lambda i: (0, 0, 0)),       # projection weight
        pl.BlockSpec((1, C), lambda i: (0, 0)),              # projection bias
    ]
    if has_mask:
        # Additive bias: 0 where kept, large-negative where masked (NaN-safe).
        bias = jnp.where(mask == 0, -1e30, 0.0).astype(jnp.float32)  # (T, T)
        inputs.append(bias)
        in_specs.append(pl.BlockSpec((T, T), lambda i: (0, 0)))

    out = pl.pallas_call(
        partial(_mha_fused_kernel, num_heads=H, head_size=hs, batch=B,
                has_mask=has_mask),
        out_shape=jax.ShapeDtypeStruct((B, T, C), jnp.float32),
        grid_spec=pltpu.PrefetchScalarGridSpec(
            num_scalar_prefetch=0,
            grid=(1,),                                    # single step: no per-step
            in_specs=in_specs,                            # DMA / pipeline overhead
            out_specs=pl.BlockSpec((B, T, C), lambda i: (0, 0, 0)),
        ),
        compiler_params=pltpu.CompilerParams(
            dimension_semantics=("arbitrary",)),
    )(*inputs)
    return out


# ------------------------------ pure-JAX reference ----------------------------

def _reference(x, wq, wk, wv, wp, bp, mask=None):
    H, hs, _ = wq.shape
    scale = hs ** (-0.5)
    outs = []
    for h in range(H):
        q = jnp.einsum('btc,sc->bts', x, wq[h], precision=PREC)
        k = jnp.einsum('btc,sc->bts', x, wk[h], precision=PREC)
        v = jnp.einsum('btc,sc->bts', x, wv[h], precision=PREC)
        att = jnp.einsum('bts,bus->btu', q, k, precision=PREC) * scale
        if mask is not None:
            att = jnp.where(mask == 0, -jnp.inf, att)
        att = jax.nn.softmax(att, axis=-1)
        outs.append(jnp.einsum('btu,bus->bts', att, v, precision=PREC))
    cat = jnp.concatenate(outs, axis=-1)
    return jnp.einsum('btd,cd->btc', cat, wp, precision=PREC) + bp


# ------------------------------------ main -------------------------------------

if __name__ == "__main__":
    # Small shapes implied by the module: B=2, T=8 (seq), embed_size=32,
    # num_heads=4, head_size=8.
    B, T, C = 2, 8, 32
    H, hs = 4, 8

    key = jax.random.PRNGKey(0)
    kx, kq, kk, kv, kp, kb, km = jax.random.split(key, 7)

    x = jax.random.normal(kx, (B, T, C), dtype=jnp.float32)
    # Deterministic parameter init (synthetic; roughly Linear-like scale).
    wq = jax.random.normal(kq, (H, hs, C), dtype=jnp.float32) * (C ** -0.5)
    wk = jax.random.normal(kk, (H, hs, C), dtype=jnp.float32) * (C ** -0.5)
    wv = jax.random.normal(kv, (H, hs, C), dtype=jnp.float32) * (C ** -0.5)
    wp = jax.random.normal(kp, (C, H * hs), dtype=jnp.float32) * ((H * hs) ** -0.5)
    bp = jax.random.normal(kb, (C,), dtype=jnp.float32) * 0.01

    # Causal mask, like a typical transformer usage (mask==0 -> masked out).
    mask = jnp.tril(jnp.ones((T, T), dtype=jnp.int32))

    out = multi_head_attention(x, wq, wk, wv, wp, bp, mask=mask)
    out = jax.block_until_ready(out)

    ref = _reference(x, wq, wk, wv, wp, bp, mask=mask)
    assert out.shape == (B, T, C)
    assert jnp.allclose(out, ref, atol=1e-3, rtol=1e-3), \
        f"max abs err {jnp.max(jnp.abs(out - ref))}"

    # Also exercise the mask=None path (mask input is dropped entirely).
    out_nm = jax.block_until_ready(
        multi_head_attention(x, wq, wk, wv, wp, bp, mask=None))
    ref_nm = _reference(x, wq, wk, wv, wp, bp, mask=None)
    assert jnp.allclose(out_nm, ref_nm, atol=1e-3, rtol=1e-3), \
        f"max abs err {jnp.max(jnp.abs(out_nm - ref_nm))}"

    print("KERNEL_OK")
</pallas_src>

<mosaic_0001>
module attributes {stable_mosaic.version = 11 : i64} {
  func.func @_mha_fused_kernel(%arg0: i32, %arg1: memref<2x8x32xf32, #tpu.memory_space<vmem>>, %arg2: memref<4x32x24xf32, #tpu.memory_space<vmem>>, %arg3: memref<4x8x32xf32, #tpu.memory_space<vmem>>, %arg4: memref<1x32xf32, #tpu.memory_space<vmem>>, %arg5: memref<8x8xf32, #tpu.memory_space<vmem>>, %arg6: memref<2x8x32xf32, #tpu.memory_space<vmem>>) attributes {dimension_semantics = [#tpu.dimension_semantics<arbitrary>], iteration_bounds = array<i64: 1>, scalar_prefetch = 0 : i64, scratch_operands = 0 : i64, tpu.core_type = #tpu.core_type<tc>, window_params = [{pipeline_mode = #tpu.pipeline_mode<synchronous>, transform_indices = @transform_0, window_bounds = array<i64: 2, 8, 32>}, {pipeline_mode = #tpu.pipeline_mode<synchronous>, transform_indices = @transform_1, window_bounds = array<i64: 4, 32, 24>}, {pipeline_mode = #tpu.pipeline_mode<synchronous>, transform_indices = @transform_2, window_bounds = array<i64: 4, 8, 32>}, {pipeline_mode = #tpu.pipeline_mode<synchronous>, transform_indices = @transform_3, window_bounds = array<i64: 1, 32>}, {pipeline_mode = #tpu.pipeline_mode<synchronous>, transform_indices = @transform_4, window_bounds = array<i64: 8, 8>}, {pipeline_mode = #tpu.pipeline_mode<synchronous>, transform_indices = @transform_5, window_bounds = array<i64: 2, 8, 32>}]} {
    %c0 = arith.constant 0 : index
    %c0_0 = arith.constant 0 : index
    %c0_1 = arith.constant 0 : index
    %0 = vector.load %arg2[%c0, %c0_0, %c0_1] : memref<4x32x24xf32, #tpu.memory_space<vmem>>, vector<4x32x24xf32>
    %c0_2 = arith.constant 0 : index
    %c0_3 = arith.constant 0 : index
    %c0_4 = arith.constant 0 : index
    %1 = vector.load %arg3[%c0_2, %c0_3, %c0_4] : memref<4x8x32xf32, #tpu.memory_space<vmem>>, vector<4x8x32xf32>
    %c0_5 = arith.constant 0 : index
    %c0_6 = arith.constant 0 : index
    %2 = vector.load %arg4[%c0_5, %c0_6] : memref<1x32xf32, #tpu.memory_space<vmem>>, vector<1x32xf32>
    %c0_7 = arith.constant 0 : index
    %c0_8 = arith.constant 0 : index
    %3 = vector.load %arg5[%c0_7, %c0_8] : memref<8x8xf32, #tpu.memory_space<vmem>>, vector<8x8xf32>
    %4 = vector.shape_cast %3 : vector<8x8xf32> to vector<1x8x8xf32>
    %c0_9 = arith.constant 0 : index
    %c0_10 = arith.constant 0 : index
    %c0_11 = arith.constant 0 : index
    %5 = vector.load %arg1[%c0_9, %c0_10, %c0_11] : memref<2x8x32xf32, #tpu.memory_space<vmem>>, vector<1x8x32xf32>
    %6 = vector.shape_cast %5 : vector<1x8x32xf32> to vector<8x32xf32>
    %7 = vector.shape_cast %6 : vector<8x32xf32> to vector<1x8x32xf32>
    %8 = vector.shape_cast %7 : vector<1x8x32xf32> to vector<1x8x32xf32>
    %9 = vector.broadcast %8 : vector<1x8x32xf32> to vector<4x8x32xf32>
    "tpu.trace_start"() <{level = 10 : i32, message = "htc,hcd->htd"}> : () -> ()
    %cst = arith.constant dense<0.000000e+00> : vector<4x8x24xf32>
    %10 = tpu.matmul %9, %0, %cst {dimension_numbers = #tpu.dot_dimension_numbers<[2], [1], [1], [2], [0, 0, 0, 1, 1, 2], [0], [0]>, precision = #tpu.contract_precision<fp32>} : vector<4x8x32xf32>, vector<4x32x24xf32>, vector<4x8x24xf32> -> vector<4x8x24xf32>
    "tpu.trace_stop"() : () -> ()
    %11 = vector.extract_strided_slice %10 {offsets = [0, 0, 0], sizes = [4, 8, 8], strides = [1, 1, 1]} : vector<4x8x24xf32> to vector<4x8x8xf32>
    %12 = vector.extract_strided_slice %10 {offsets = [0, 0, 8], sizes = [4, 8, 8], strides = [1, 1, 1]} : vector<4x8x24xf32> to vector<4x8x8xf32>
    %13 = vector.extract_strided_slice %10 {offsets = [0, 0, 16], sizes = [4, 8, 8], strides = [1, 1, 1]} : vector<4x8x24xf32> to vector<4x8x8xf32>
    "tpu.trace_start"() <{level = 10 : i32, message = "hts,hus->htu"}> : () -> ()
    %cst_12 = arith.constant dense<0.000000e+00> : vector<4x8x8xf32>
    %14 = tpu.matmul %11, %12, %cst_12 {dimension_numbers = #tpu.dot_dimension_numbers<[2], [2], [1], [1], [0, 0, 0, 1, 1, 1], [0], [0]>, precision = #tpu.contract_precision<fp32>} : vector<4x8x8xf32>, vector<4x8x8xf32>, vector<4x8x8xf32> -> vector<4x8x8xf32>
    "tpu.trace_stop"() : () -> ()
    %15 = vector.broadcast %4 : vector<1x8x8xf32> to vector<4x8x8xf32>
    %16 = arith.addf %14, %15 : vector<4x8x8xf32>
    %cst_13 = arith.constant dense<0xFF800000> : vector<4x8xf32>
    %17 = vector.multi_reduction <maximumf>, %16, %cst_13 [2] : vector<4x8x8xf32> to vector<4x8xf32>
    %18 = vector.shape_cast %17 : vector<4x8xf32> to vector<4x8x1xf32>
    %19 = vector.broadcast %18 : vector<4x8x1xf32> to vector<4x8x8xf32>
    %20 = arith.subf %16, %19 : vector<4x8x8xf32>
    %21 = math.exp %20 : vector<4x8x8xf32>
    %cst_14 = arith.constant dense<0.000000e+00> : vector<4x8xf32>
    %22 = vector.multi_reduction <add>, %21, %cst_14 [2] : vector<4x8x8xf32> to vector<4x8xf32>
    %23 = vector.shape_cast %22 : vector<4x8xf32> to vector<4x8x1xf32>
    %24 = vector.broadcast %23 : vector<4x8x1xf32> to vector<4x8x8xf32>
    %25 = arith.divf %21, %24 : vector<4x8x8xf32>
    "tpu.trace_start"() <{level = 10 : i32, message = "htu,hus->hts"}> : () -> ()
    %cst_15 = arith.constant dense<0.000000e+00> : vector<4x8x8xf32>
    %26 = tpu.matmul %25, %13, %cst_15 {dimension_numbers = #tpu.dot_dimension_numbers<[2], [1], [1], [2], [0, 0, 0, 1, 1, 2], [0], [0]>, precision = #tpu.contract_precision<fp32>} : vector<4x8x8xf32>, vector<4x8x8xf32>, vector<4x8x8xf32> -> vector<4x8x8xf32>
    "tpu.trace_stop"() : () -> ()
    "tpu.trace_start"() <{level = 10 : i32, message = "hts,hsc->htc"}> : () -> ()
    %cst_16 = arith.constant dense<0.000000e+00> : vector<4x8x32xf32>
    %27 = tpu.matmul %26, %1, %cst_16 {dimension_numbers = #tpu.dot_dimension_numbers<[2], [1], [1], [2], [0, 0, 0, 1, 1, 2], [0], [0]>, precision = #tpu.contract_precision<fp32>} : vector<4x8x8xf32>, vector<4x8x32xf32>, vector<4x8x32xf32> -> vector<4x8x32xf32>
    "tpu.trace_stop"() : () -> ()
    %cst_17 = arith.constant dense<0.000000e+00> : vector<8x32xf32>
    %28 = vector.multi_reduction <add>, %27, %cst_17 [0] : vector<4x8x32xf32> to vector<8x32xf32>
    %29 = vector.broadcast %2 : vector<1x32xf32> to vector<8x32xf32>
    %30 = arith.addf %28, %29 : vector<8x32xf32>
    %c0_18 = arith.constant 0 : index
    %c0_19 = arith.constant 0 : index
    %c0_20 = arith.constant 0 : index
    %31 = vector.load %arg6[%c0_18, %c0_19, %c0_20] : memref<2x8x32xf32, #tpu.memory_space<vmem>>, vector<1x8x32xf32>
    %32 = vector.shape_cast %31 : vector<1x8x32xf32> to vector<8x32xf32>
    %33 = vector.shape_cast %30 : vector<8x32xf32> to vector<1x8x32xf32>
    tpu.vector_store %arg6[%c0_18, %c0_19, %c0_20], %33 {strides = array<i32>} : memref<2x8x32xf32, #tpu.memory_space<vmem>>, vector<1x8x32xf32>,
    %c1 = arith.constant 1 : index
    %c0_21 = arith.constant 0 : index
    %c0_22 = arith.constant 0 : index
    %34 = vector.load %arg1[%c1, %c0_21, %c0_22] : memref<2x8x32xf32, #tpu.memory_space<vmem>>, vector<1x8x32xf32>
    %35 = vector.shape_cast %34 : vector<1x8x32xf32> to vector<8x32xf32>
    %36 = vector.shape_cast %35 : vector<8x32xf32> to vector<1x8x32xf32>
    %37 = vector.shape_cast %36 : vector<1x8x32xf32> to vector<1x8x32xf32>
    %38 = vector.broadcast %37 : vector<1x8x32xf32> to vector<4x8x32xf32>
    "tpu.trace_start"() <{level = 10 : i32, message = "htc,hcd->htd"}> : () -> ()
    %cst_23 = arith.constant dense<0.000000e+00> : vector<4x8x24xf32>
    %39 = tpu.matmul %38, %0, %cst_23 {dimension_numbers = #tpu.dot_dimension_numbers<[2], [1], [1], [2], [0, 0, 0, 1, 1, 2], [0], [0]>, precision = #tpu.contract_precision<fp32>} : vector<4x8x32xf32>, vector<4x32x24xf32>, vector<4x8x24xf32> -> vector<4x8x24xf32>
    "tpu.trace_stop"() : () -> ()
    %40 = vector.extract_strided_slice %39 {offsets = [0, 0, 0], sizes = [4, 8, 8], strides = [1, 1, 1]} : vector<4x8x24xf32> to vector<4x8x8xf32>
    %41 = vector.extract_strided_slice %39 {offsets = [0, 0, 8], sizes = [4, 8, 8], strides = [1, 1, 1]} : vector<4x8x24xf32> to vector<4x8x8xf32>
    %42 = vector.extract_strided_slice %39 {offsets = [0, 0, 16], sizes = [4, 8, 8], strides = [1, 1, 1]} : vector<4x8x24xf32> to vector<4x8x8xf32>
    "tpu.trace_start"() <{level = 10 : i32, message = "hts,hus->htu"}> : () -> ()
    %cst_24 = arith.constant dense<0.000000e+00> : vector<4x8x8xf32>
    %43 = tpu.matmul %40, %41, %cst_24 {dimension_numbers = #tpu.dot_dimension_numbers<[2], [2], [1], [1], [0, 0, 0, 1, 1, 1], [0], [0]>, precision = #tpu.contract_precision<fp32>} : vector<4x8x8xf32>, vector<4x8x8xf32>, vector<4x8x8xf32> -> vector<4x8x8xf32>
    "tpu.trace_stop"() : () -> ()
    %44 = vector.broadcast %4 : vector<1x8x8xf32> to vector<4x8x8xf32>
    %45 = arith.addf %43, %44 : vector<4x8x8xf32>
    %cst_25 = arith.constant dense<0xFF800000> : vector<4x8xf32>
    %46 = vector.multi_reduction <maximumf>, %45, %cst_25 [2] : vector<4x8x8xf32> to vector<4x8xf32>
    %47 = vector.shape_cast %46 : vector<4x8xf32> to vector<4x8x1xf32>
    %48 = vector.broadcast %47 : vector<4x8x1xf32> to vector<4x8x8xf32>
    %49 = arith.subf %45, %48 : vector<4x8x8xf32>
    %50 = math.exp %49 : vector<4x8x8xf32>
    %cst_26 = arith.constant dense<0.000000e+00> : vector<4x8xf32>
    %51 = vector.multi_reduction <add>, %50, %cst_26 [2] : vector<4x8x8xf32> to vector<4x8xf32>
    %52 = vector.shape_cast %51 : vector<4x8xf32> to vector<4x8x1xf32>
    %53 = vector.broadcast %52 : vector<4x8x1xf32> to vector<4x8x8xf32>
    %54 = arith.divf %50, %53 : vector<4x8x8xf32>
    "tpu.trace_start"() <{level = 10 : i32, message = "htu,hus->hts"}> : () -> ()
    %cst_27 = arith.constant dense<0.000000e+00> : vector<4x8x8xf32>
    %55 = tpu.matmul %54, %42, %cst_27 {dimension_numbers = #tpu.dot_dimension_numbers<[2], [1], [1], [2], [0, 0, 0, 1, 1, 2], [0], [0]>, precision = #tpu.contract_precision<fp32>} : vector<4x8x8xf32>, vector<4x8x8xf32>, vector<4x8x8xf32> -> vector<4x8x8xf32>
    "tpu.trace_stop"() : () -> ()
    "tpu.trace_start"() <{level = 10 : i32, message = "hts,hsc->htc"}> : () -> ()
    %cst_28 = arith.constant dense<0.000000e+00> : vector<4x8x32xf32>
    %56 = tpu.matmul %55, %1, %cst_28 {dimension_numbers = #tpu.dot_dimension_numbers<[2], [1], [1], [2], [0, 0, 0, 1, 1, 2], [0], [0]>, precision = #tpu.contract_precision<fp32>} : vector<4x8x8xf32>, vector<4x8x32xf32>, vector<4x8x32xf32> -> vector<4x8x32xf32>
    "tpu.trace_stop"() : () -> ()
    %cst_29 = arith.constant dense<0.000000e+00> : vector<8x32xf32>
    %57 = vector.multi_reduction <add>, %56, %cst_29 [0] : vector<4x8x32xf32> to vector<8x32xf32>
    %58 = vector.broadcast %2 : vector<1x32xf32> to vector<8x32xf32>
    %59 = arith.addf %57, %58 : vector<8x32xf32>
    %c1_30 = arith.constant 1 : index
    %c0_31 = arith.constant 0 : index
    %c0_32 = arith.constant 0 : index
    %60 = vector.load %arg6[%c1_30, %c0_31, %c0_32] : memref<2x8x32xf32, #tpu.memory_space<vmem>>, vector<1x8x32xf32>
    %61 = vector.shape_cast %60 : vector<1x8x32xf32> to vector<8x32xf32>
    %62 = vector.shape_cast %59 : vector<8x32xf32> to vector<1x8x32xf32>
    tpu.vector_store %arg6[%c1_30, %c0_31, %c0_32], %62 {strides = array<i32>} : memref<2x8x32xf32, #tpu.memory_space<vmem>>, vector<1x8x32xf32>,
    return
  }
  func.func @transform_0(%arg0: i32) -> (i32, i32, i32) {
    %c0_i32 = arith.constant 0 : i32
    %c0_i32_0 = arith.constant 0 : i32
    %c0_i32_1 = arith.constant 0 : i32
    %c0_i32_2 = arith.constant 0 : i32
    return %c0_i32, %c0_i32_0, %c0_i32_1 : i32, i32, i32
  }
  func.func @transform_1(%arg0: i32) -> (i32, i32, i32) {
    %c0_i32 = arith.constant 0 : i32
    %c0_i32_0 = arith.constant 0 : i32
    %c0_i32_1 = arith.constant 0 : i32
    %c0_i32_2 = arith.constant 0 : i32
    return %c0_i32, %c0_i32_0, %c0_i32_1 : i32, i32, i32
  }
  func.func @transform_2(%arg0: i32) -> (i32, i32, i32) {
    %c0_i32 = arith.constant 0 : i32
    %c0_i32_0 = arith.constant 0 : i32
    %c0_i32_1 = arith.constant 0 : i32
    %c0_i32_2 = arith.constant 0 : i32
    return %c0_i32, %c0_i32_0, %c0_i32_1 : i32, i32, i32
  }
  func.func @transform_3(%arg0: i32) -> (i32, i32) {
    %c0_i32 = arith.constant 0 : i32
    %c0_i32_0 = arith.constant 0 : i32
    %c0_i32_1 = arith.constant 0 : i32
    return %c0_i32, %c0_i32_0 : i32, i32
  }
  func.func @transform_4(%arg0: i32) -> (i32, i32) {
    %c0_i32 = arith.constant 0 : i32
    %c0_i32_0 = arith.constant 0 : i32
    %c0_i32_1 = arith.constant 0 : i32
    return %c0_i32, %c0_i32_0 : i32, i32
  }
  func.func @transform_5(%arg0: i32) -> (i32, i32, i32) {
    %c0_i32 = arith.constant 0 : i32
    %c0_i32_0 = arith.constant 0 : i32
    %c0_i32_1 = arith.constant 0 : i32
    %c0_i32_2 = arith.constant 0 : i32
    return %c0_i32, %c0_i32_0, %c0_i32_1 : i32, i32, i32
  }
}

</mosaic_0001>

<bundles_post_ra>
// kernel: tpu_custom_call.1
= control target key start
LH: loop header
LB: loop body
LE: loop exit
PB: predicated region body
PF: predicated region fallthrough
CT: control target
= control target key end

     0   :  { %v17355_v3 = vmov 0.0|0.0   ;;  %vm17356_vm0 = vmmov 0   ;;  %v17357_v15 = vmov 0.0   ;;  %vm44_vm1 = vcmask 261120   ;;  %s18849_s0 = inlined_call_operand.vmem [shape: f32[2,8,32], index: 0, kind: input, shape index: {}]   ;;  %s18850_s1 = inlined_call_operand.vmem [shape: f32[4,32,24], index: 1, kind: input, shape index: {}]   ;;  %s18851_s2 = inlined_call_operand.vmem [shape: f32[4,8,32], index: 2, kind: input, shape index: {}]   ;;  %s18852_s3 = inlined_call_operand.vmem [shape: f32[1,32], index: 3, kind: input, shape index: {}]   ;;  %s18853_s4 = inlined_call_operand.vmem [shape: f32[8,8], index: 4, kind: input, shape index: {}]   ;;  %s18854_s5 = inlined_call_operand.hbm [shape: f32[2,8,32], index: 5, kind: output, shape index: {}]  }
   0x1   :  { %v21_v0 = vld [vmem:[%s18850_s1] sm:$0xff]  ;;  %v22_v1 = vld [vmem:[%s18850_s1 + $0x8] sm:$0xff]  ;;  %16673 = vmatprep.subr.bf16.mxu0 %v17355_v3  ;;  %16709 = vmatprep.subr.bf16.mxu1 %v17355_v3  ;;  %v23_v8 = vld [vmem:[%s18850_s1 + $0x10] sm:$0xff] }
   0x2   :  { %v25_v2 = vld [vmem:[%s18850_s1 + $0x20] sm:$0xff]  ;;  %v49_v4 = vand.u32 4294901760, %v21_v0  ;;  %v52_v5 = vand.u32 4294901760, %v22_v1  ;;  %v26_v6 = vld [vmem:[%s18850_s1 + $0x28] sm:$0xff]  ;;  %v24_v9 = vld [vmem:[%s18850_s1 + $0x18] sm:$0xff]  ;;  %v55_v11 = vand.u32 4294901760, %v23_v8  ;;  %15433 = vmatprep.mubr.msk.f32.mxu0 %vm17356_vm0, %v17357_v15  ;;  %15499 = vmatprep.mubr.msk.f32.mxu1 %vm17356_vm0, %v17357_v15 }
   0x3   :  { %v534_v7 = vand.u32 4294901760, %v25_v2  ;;  %v537_v10 = vand.u32 4294901760, %v26_v6  ;;  %v58_v12 = vand.u32 4294901760, %v24_v9  ;;  %v27_v13 = vld [vmem:[%s18850_s1 + $0x30] sm:$0xff]  ;;  %v28_v14 = vld [vmem:[%s18850_s1 + $0x38] sm:$0xff]  ;;  %v43_v16 = vld [vmem:[%s18849_s0] sm:$0xff] }
   0x4   :  { %v17426_v17 = vpack.c.bf16 %v52_v5, %v49_v4  ;;  %v540_v18 = vand.u32 4294901760, %v27_v13  ;;  %v543_v19 = vand.u32 4294901760, %v28_v14  ;;  %v46_v22 = vsel %vm44_vm1, %v43_v16, 0 }
   0x5   :  { %v17428_v20 = vpack.c.bf16 %v537_v10, %v534_v7  ;;  %v17430_v21 = vpack.c.bf16 %v58_v12, %v55_v11  ;;  %v17433_v23 = vsub.f32 %v21_v0, %v49_v4  ;;  %v17438_v25 = vand.u32 4294901760, %v46_v22 }
   0x6   :  { %16675 = vmatpush3.bf16.msra.mxu0 %v17426_v17  ;;  %v17436_v24 = vpack.c.bf16 %v543_v19, %v540_v18  ;;  %v17440_v26 = vsub.f32 %v22_v1, %v52_v5  ;;  %v17442_v27 = vsub.f32 %v25_v2, %v534_v7 }
   0x7   :  { %10 = vsyncpa [#allocation3], 0  ;;  %16711 = vmatpush3.bf16.msra.mxu1 %v17428_v20  ;;  %16676 = vmatprep.subr.bf16.mxu0 %v17355_v3  ;;  %v130_v28 = vand.u32 4294901760, %v17433_v23  ;;  %v17447_v29 = vsub.f32 %v26_v6, %v537_v10  ;;  %v17449_v30 = vsub.f32 %v23_v8, %v55_v11  ;;  %v17451_v31 = vsub.f32 %v24_v9, %v58_v12  ;;  %v29_v7 = vld [vmem:[%s18850_s1 + $0x40] sm:$0xff]  ;;  %v30_v8 = vld [vmem:[%s18850_s1 + $0x48] sm:$0xff]  ;;  %s17359_s29 = smov 112  }
   0x8   :  { %16712 = vmatprep.subr.bf16.mxu1 %v17355_v3  ;;  %v17455_v32 = vsub.f32 %v46_v22, %v17438_v25  ;;  %v137_v33 = vand.u32 4294901760, %v17440_v26  ;;  %v615_v34 = vand.u32 4294901760, %v17442_v27  ;;  %v17459_v35 = vsub.f32 %v27_v13, %v540_v18  ;;  %v33_v10 = vld [vmem:[%s18850_s1 + $0x60] sm:$0xff]  ;;  %v34_v11 = vld [vmem:[%s18850_s1 + $0x68] sm:$0xff]  ;;  %v31_v16 = vld [vmem:[%s18850_s1 + $0x50] sm:$0xff] }
   0x9   :  { %v131_v36 = vsub.f32 %v17433_v23, %v130_v28  ;;  %v622_v37 = vand.u32 4294901760, %v17447_v29  ;;  %v144_v38 = vand.u32 4294901760, %v17449_v30  ;;  %v151_v39 = vand.u32 4294901760, %v17451_v31  ;;  %v32_v18 = vld [vmem:[%s18850_s1 + $0x58] sm:$0xff] }
   0xa   :  { %16678 = vmatpush3.bf16.msra.mxu0 %v17430_v21  ;;  %v17469_v40 = vand.u32 4294901760, %v17455_v32  ;;  %v138_v41 = vsub.f32 %v17440_v26, %v137_v33  ;;  %v616_v42 = vsub.f32 %v17442_v27, %v615_v34  ;;  %v629_v43 = vand.u32 4294901760, %v17459_v35 }
   0xb   :  { %16714 = vmatpush3.bf16.msra.mxu1 %v17436_v24  ;;  %16679 = vmatprep.subr.bf16.mxu0 %v17355_v3  ;;  %v132_v44 = vand.u32 4294901760, %v131_v36  ;;  %v623_v45 = vsub.f32 %v17447_v29, %v622_v37  ;;  %v145_v46 = vsub.f32 %v17449_v30, %v144_v38  ;;  %v152_v47 = vsub.f32 %v17451_v31, %v151_v39 }
   0xc   :  { %v120_v48 = vsub.f32 %v17455_v32, %v17469_v40  ;;  %16715 = vmatprep.subr.bf16.mxu1 %v17355_v3  ;;  %v139_v49 = vand.u32 4294901760, %v138_v41  ;;  %v617_v50 = vand.u32 4294901760, %v616_v42  ;;  %v630_v51 = vsub.f32 %v17459_v35, %v629_v43 }
   0xd   :  { %v624_v52 = vand.u32 4294901760, %v623_v45  ;;  %v146_v53 = vand.u32 4294901760, %v145_v46  ;;  %v153_v54 = vand.u32 4294901760, %v152_v47  ;;  %v17495_v55 = vsub.f32 %v28_v14, %v543_v19 }
   0xe   :  { %v17497_v56 = vand.u32 4294901760, %v120_v48  ;;  %v17499_v57 = vpack.c.bf16 %v139_v49, %v132_v44  ;;  %v631_v61 = vand.u32 4294901760, %v630_v51  ;;  %v17524_v1 = vpack.c.bf16 %v17440_v26, %v17433_v23  ;;  %v35_v26 = vld [vmem:[%s18850_s1 + $0x70] sm:$0xff] }
   0xf   :  { %v17501_v58 = vpack.c.bf16 %v624_v52, %v617_v50  ;;  %v636_v59 = vand.u32 4294901760, %v17495_v55  ;;  %v17508_v60 = vpack.c.bf16 %v153_v54, %v146_v53  ;;  %v17530_v2 = vpack.c.bf16 %v17447_v29, %v17442_v27  ;;  %v36_v27 = vld [vmem:[%s18850_s1 + $0x78] sm:$0xff]  ;;  %s17358_s1 = smov 120  }
  0x10   :  { %15434 = vmatmul.mubr.f32.vlgmr.msra.gmra.mrb[0].mxu0 %v17497_v56  ;;  %15500 = vmatmul.mubr.f32.vlgmr.msra.gmra.mrb[0].mxu1 %v17497_v56  ;;  %v17537_v4 = vpack.c.bf16 %v17451_v31, %v17449_v30  ;;  %v17546_v5 = vpack.c.bf16 %v17495_v55, %v17459_v35  ;;  %v17570_v6 = vpack.c.bf16 %v137_v33, %v130_v28  ;;  %v1019_v13 = vand.u32 4294901760, %v29_v7 }
  0x11   :  { %16681 = vmatpush3.bf16.msra.mxu0 %v17499_v57  ;;  %16717 = vmatpush3.bf16.msra.mxu1 %v17501_v58  ;;  %v637_v62 = vsub.f32 %v17495_v55, %v636_v59  ;;  %v17584_v9 = vpack.c.bf16 %v622_v37, %v615_v34  ;;  %v17599_v12 = vpack.c.bf16 %v151_v39, %v144_v38  ;;  %v1022_v14 = vand.u32 4294901760, %v30_v8 }
  0x12   :  { %16682 = vmatprep.subr.bf16.mxu0 %v17355_v3  ;;  %16718 = vmatprep.subr.bf16.mxu1 %v17355_v3  ;;  %v17616_v19 = vpack.c.bf16 %v636_v59, %v629_v43  ;;  %v1504_v22 = vand.u32 4294901760, %v33_v10  ;;  %v1507_v23 = vand.u32 4294901760, %v34_v11  ;;  %v1025_v28 = vand.u32 4294901760, %v31_v16 }
  0x13   :  { %v638_v63 = vand.u32 4294901760, %v637_v62  ;;  %15444 = vmatprep.mubr.msk.f32.mxu0 %vm17356_vm0, %v17357_v15  ;;  %15510 = vmatprep.mubr.msk.f32.mxu1 %vm17356_vm0, %v17357_v15  ;;  %v1028_v29 = vand.u32 4294901760, %v32_v18  ;;  %v17628_v30 = vsub.f32 %v29_v7, %v1019_v13  ;;  %v17630_v31 = vsub.f32 %v30_v8, %v1022_v14 }
  0x14   :  { %v1510_v33 = vand.u32 4294901760, %v35_v26  ;;  %v1513_v34 = vand.u32 4294901760, %v36_v27  ;;  %v17634_v35 = vsub.f32 %v33_v10, %v1504_v22  ;;  %v17636_v36 = vsub.f32 %v34_v11, %v1507_v23 }
  0x15   :  { %16684 = vmatpush3.bf16.msra.mxu0 %v17508_v60  ;;  %v17520_v0 = vpack.c.bf16 %v638_v63, %v631_v61  ;;  %v1100_v37 = vand.u32 4294901760, %v17628_v30  ;;  %v1107_v38 = vand.u32 4294901760, %v17630_v31  ;;  %v17645_v39 = vsub.f32 %v31_v16, %v1025_v28 }
  0x16   :  { %16685 = vmatprep.subr.bf16.mxu0 %v17355_v3  ;;  %v17647_v41 = vsub.f32 %v32_v18, %v1028_v29  ;;  %v1585_v42 = vand.u32 4294901760, %v17634_v35  ;;  %v1592_v43 = vand.u32 4294901760, %v17636_v36  ;;  %v17656_v44 = vsub.f32 %v35_v26, %v1510_v33 }
  0x17   :  { %16720 = vmatpush3.bf16.msra.mxu1 %v17520_v0  ;;  %v17658_v45 = vsub.f32 %v36_v27, %v1513_v34  ;;  %v17661_v46 = vpack.c.bf16 %v1022_v14, %v1019_v13  ;;  %v1101_v47 = vsub.f32 %v17628_v30, %v1100_v37  ;;  %v1108_v48 = vsub.f32 %v17630_v31, %v1107_v38 }
  0x18   :  { %15445 = vmatmul.mubr.f32.vlgmr.msra.gmra.mrb[0].mxu0 %v17438_v25  ;;  %16721 = vmatprep.subr.bf16.mxu1 %v17355_v3  ;;  %v1114_v49 = vand.u32 4294901760, %v17645_v39  ;;  %v1121_v50 = vand.u32 4294901760, %v17647_v41  ;;  %v17673_v51 = vpack.c.bf16 %v1507_v23, %v1504_v22  ;;  %v1586_v52 = vsub.f32 %v17634_v35, %v1585_v42 }
  0x19   :  { %16687 = vmatpush3.bf16.msra.mxu0 %v17524_v1  ;;  %15455 = vmatprep.mubr.msk.f32.mxu0 %vm17356_vm0, %v17357_v15  ;;  %v1593_v53 = vsub.f32 %v17636_v36, %v1592_v43  ;;  %v1599_v54 = vand.u32 4294901760, %v17656_v44  ;;  %v1606_v55 = vand.u32 4294901760, %v17658_v45  ;;  %v17686_v59 = vpack.c.bf16 %v1028_v29, %v1025_v28 }
  0x1a   :  { %15511 = vmatmul.mubr.f32.vlgmr.msra.gmra.mrb[0].mxu1 %v17438_v25  ;;  %16688 = vmatprep.subr.bf16.mxu0 %v17355_v3  ;;  %v1102_v61 = vand.u32 4294901760, %v1101_v47  ;;  %v1109_v62 = vand.u32 4294901760, %v1108_v48  ;;  %v1115_v63 = vsub.f32 %v17645_v39, %v1114_v49  ;;  %v1122_v7 = vsub.f32 %v17647_v41, %v1121_v50 }
  0x1b   :  { %16723 = vmatpush3.bf16.msra.mxu1 %v17530_v2  ;;  %15521 = vmatprep.mubr.msk.f32.mxu1 %vm17356_vm0, %v17357_v15  ;;  %v17699_v8 = vpack.c.bf16 %v1513_v34, %v1510_v33  ;;  %v1587_v10 = vand.u32 4294901760, %v1586_v52  ;;  %v1594_v11 = vand.u32 4294901760, %v1593_v53  ;;  %v1600_v13 = vsub.f32 %v17656_v44, %v1599_v54 }
  0x1c   :  { %16724 = vmatprep.subr.bf16.mxu1 %v17355_v3  ;;  %v1607_v14 = vsub.f32 %v17658_v45, %v1606_v55  ;;  %v17712_v16 = vpack.c.bf16 %v1109_v62, %v1102_v61  ;;  %v1116_v18 = vand.u32 4294901760, %v1115_v63  ;;  %v1123_v22 = vand.u32 4294901760, %v1122_v7 }
  0x1d   :  { %16690 = vmatpush3.bf16.msra.mxu0 %v17537_v4  ;;  %v17716_v23 = vpack.c.bf16 %v1594_v11, %v1587_v10  ;;  %v1601_v26 = vand.u32 4294901760, %v1600_v13  ;;  %v17736_v33 = vpack.c.bf16 %v17630_v31, %v17628_v30  ;;  %v17749_v34 = vpack.c.bf16 %v17647_v41, %v17645_v39 }
  0x1e   :  { %16691 = vmatprep.subr.bf16.mxu0 %v17355_v3  ;;  %v1608_v27 = vand.u32 4294901760, %v1607_v14  ;;  %v17721_v28 = vpack.c.bf16 %v1123_v22, %v1116_v18  ;;  %v17758_v47 = vpack.c.bf16 %v17658_v45, %v17656_v44  ;;  %v17782_v48 = vpack.c.bf16 %v1107_v38, %v1100_v37 }
  0x1f   :  { %16726 = vmatpush3.bf16.msra.mxu1 %v17546_v5  ;;  %v17799_v30 = vpack.c.bf16 %v1121_v50, %v1114_v49  ;;  %v17810_v31 = vpack.c.bf16 %v1606_v55, %v1599_v54  ;;  %vm1991_vm2 = vcmask 64512  }
  0x20   :  { %15456 = vmatmul.mubr.f32.vlgmr.msra.gmra.mrb[0].mxu0 %v17455_v32  ;;  %16727 = vmatprep.subr.bf16.mxu1 %v17355_v3  ;;  %v17728_v29 = vpack.c.bf16 %v1608_v27, %v1601_v26 }
  0x21   :  { %16693 = vmatpush3.bf16.msra.mxu0 %v17426_v17  ;;  %15466 = vmatprep.mubr.msk.f32.mxu0 %vm17356_vm0, %v17357_v15 }
  0x22   :  { %15522 = vmatmul.mubr.f32.vlgmr.msra.gmra.mrb[0].mxu1 %v17455_v32  ;;  %16694 = vmatprep.subr.bf16.mxu0 %v17355_v3 }
  0x23   :  { %16729 = vmatpush3.bf16.msra.mxu1 %v17428_v20  ;;  %15532 = vmatprep.mubr.msk.f32.mxu1 %vm17356_vm0, %v17357_v15 }
  0x24   :  { %16730 = vmatprep.subr.bf16.mxu1 %v17355_v3 }
  0x25   :  { %16696 = vmatpush3.bf16.msra.mxu0 %v17430_v21 }
  0x26   :  { %16697 = vmatprep.subr.bf16.mxu0 %v17355_v3 }
  0x27   :  { %16732 = vmatpush3.bf16.msra.mxu1 %v17436_v24 }
  0x28   :  { %15467 = vmatmul.mubr.f32.vlgmr.msra.gmra.mrb[0].mxu0 %v17469_v40  ;;  %16733 = vmatprep.subr.bf16.mxu1 %v17355_v3 }
  0x29   :  { %16699 = vmatpush3.bf16.msra.mxu0 %v17570_v6  ;;  %15477 = vmatprep.mubr.msk.f32.mxu0 %vm17356_vm0, %v17357_v15 }
  0x2a   :  { %15533 = vmatmul.mubr.f32.vlgmr.msra.gmra.mrb[0].mxu1 %v17469_v40  ;;  %16700 = vmatprep.subr.bf16.mxu0 %v17355_v3 }
  0x2b   :  { %16735 = vmatpush3.bf16.msra.mxu1 %v17584_v9  ;;  %15543 = vmatprep.mubr.msk.f32.mxu1 %vm17356_vm0, %v17357_v15 }
  0x2c   :  { %16736 = vmatprep.subr.bf16.mxu1 %v17355_v3 }
  0x2d   :  { %16702 = vmatpush3.bf16.msra.mxu0 %v17599_v12 }
  0x2e   :  { %16703 = vmatprep.subr.bf16.mxu0 %v17355_v3 }
  0x2f   :  { %16738 = vmatpush3.bf16.msra.mxu1 %v17616_v19 }
  0x30   :  { %15478 = vmatmul.mubr.f32.vlgmr.msra.gmra.mrb[0].mxu0 %v17438_v25  ;;  %16739 = vmatprep.subr.bf16.mxu1 %v17355_v3 }
  0x31   :  { %16705 = vmatpush3.bf16.msra.mxu0 %v17426_v17  ;;  %15488 = vmatprep.mubr.msk.f32.mxu0 %vm17356_vm0, %v17357_v15 }
  0x32   :  { %15544 = vmatmul.mubr.f32.vlgmr.msra.gmra.mrb[0].mxu1 %v17438_v25  ;;  %16706 = vmatprep.subr.bf16.mxu0 %v17355_v3 }
  0x33   :  { %16741 = vmatpush3.bf16.msra.mxu1 %v17428_v20  ;;  %15554 = vmatprep.mubr.msk.f32.mxu1 %vm17356_vm0, %v17357_v15 }
  0x34   :  { %16742 = vmatprep.subr.bf16.mxu1 %v17355_v3 }
  0x35   :  { %16708 = vmatpush3.bf16.msra.mxu0 %v17430_v21 }
  0x36   :  { %16745 = vmatprep.subr.bf16.mxu0 %v17355_v3 }
  0x37   :  { %16744 = vmatpush3.bf16.msra.mxu1 %v17436_v24 }
  0x38   :  { %15489 = vmatmul.mubr.f32.vlgmr.msra.gmra.mrb[0].mxu0 %v17438_v25  ;;  %16781 = vmatprep.subr.bf16.mxu1 %v17355_v3 }
  0x39   :  { %16747 = vmatpush3.bf16.msra.mxu0 %v17661_v46  ;;  %15565 = vmatprep.mubr.msk.f32.mxu0 %vm17356_vm0, %v17357_v15 }
  0x3a   :  { %15555 = vmatmul.mubr.f32.vlgmr.msra.gmra.mrb[0].mxu1 %v17438_v25  ;;  %16748 = vmatprep.subr.bf16.mxu0 %v17355_v3 }
  0x3b   :  { %16783 = vmatpush3.bf16.msra.mxu1 %v17673_v51  ;;  %15631 = vmatprep.mubr.msk.f32.mxu1 %vm17356_vm0, %v17357_v15 }
  0x3c   :  { %16784 = vmatprep.subr.bf16.mxu1 %v17355_v3 }
  0x3d   :  { %16750 = vmatpush3.bf16.msra.mxu0 %v17686_v59 }
  0x3e   :  { %16751 = vmatprep.subr.bf16.mxu0 %v17355_v3 }
  0x3f   :  { %16786 = vmatpush3.bf16.msra.mxu1 %v17699_v8 }
  0x40   :  { %15566 = vmatmul.mubr.f32.vlgmr.msra.gmra.mrb[2].mxu0 %v17497_v56  ;;  %16787 = vmatprep.subr.bf16.mxu1 %v17355_v3 }
  0x41   :  { %16753 = vmatpush3.bf16.msra.mxu0 %v17712_v16  ;;  %15576 = vmatprep.mubr.msk.f32.mxu0 %vm17356_vm0, %v17357_v15 }
  0x42   :  { %15632 = vmatmul.mubr.f32.vlgmr.msra.gmra.mrb[2].mxu1 %v17497_v56  ;;  %16754 = vmatprep.subr.bf16.mxu0 %v17355_v3  ;;  %v17742_v56 = vpack.c.bf16 %v17636_v36, %v17634_v35 }
  0x43   :  { %16789 = vmatpush3.bf16.msra.mxu1 %v17716_v23  ;;  %15642 = vmatprep.mubr.msk.f32.mxu1 %vm17356_vm0, %v17357_v15 }
  0x44   :  { %16790 = vmatprep.subr.bf16.mxu1 %v17355_v3 }
  0x45   :  { %16756 = vmatpush3.bf16.msra.mxu0 %v17721_v28 }
  0x46   :  { %16757 = vmatprep.subr.bf16.mxu0 %v17355_v3 }
  0x47   :  { %16792 = vmatpush3.bf16.msra.mxu1 %v17728_v29 }
  0x48   :  { %15577 = vmatmul.mubr.f32.vlgmr.msra.gmra.mrb[2].mxu0 %v17438_v25  ;;  %16793 = vmatprep.subr.bf16.mxu1 %v17355_v3 }
  0x49   :  { %16759 = vmatpush3.bf16.msra.mxu0 %v17736_v33  ;;  %15587 = vmatprep.mubr.msk.f32.mxu0 %vm17356_vm0, %v17357_v15 }
  0x4a   :  { %15643 = vmatmul.mubr.f32.vlgmr.msra.gmra.mrb[2].mxu1 %v17438_v25  ;;  %16760 = vmatprep.subr.bf16.mxu0 %v17355_v3 }
  0x4b   :  { %16795 = vmatpush3.bf16.msra.mxu1 %v17742_v56  ;;  %15653 = vmatprep.mubr.msk.f32.mxu1 %vm17356_vm0, %v17357_v15 }
  0x4c   :  { %16796 = vmatprep.subr.bf16.mxu1 %v17355_v3 }
  0x4d   :  { %16762 = vmatpush3.bf16.msra.mxu0 %v17749_v34 }
  0x4e   :  { %16763 = vmatprep.subr.bf16.mxu0 %v17355_v3 }
  0x4f   :  { %16798 = vmatpush3.bf16.msra.mxu1 %v17758_v47 }
  0x50   :  { %15588 = vmatmul.mubr.f32.vlgmr.msra.gmra.mrb[2].mxu0 %v17455_v32  ;;  %16799 = vmatprep.subr.bf16.mxu1 %v17355_v3 }
  0x51   :  { %16765 = vmatpush3.bf16.msra.mxu0 %v17661_v46  ;;  %15598 = vmatprep.mubr.msk.f32.mxu0 %vm17356_vm0, %v17357_v15 }
  0x52   :  { %15654 = vmatmul.mubr.f32.vlgmr.msra.gmra.mrb[2].mxu1 %v17455_v32  ;;  %16766 = vmatprep.subr.bf16.mxu0 %v17355_v3  ;;  %v17790_v32 = vpack.c.bf16 %v1592_v43, %v1585_v42 }
  0x53   :  { %16801 = vmatpush3.bf16.msra.mxu1 %v17673_v51  ;;  %15664 = vmatprep.mubr.msk.f32.mxu1 %vm17356_vm0, %v17357_v15 }
  0x54   :  { %16802 = vmatprep.subr.bf16.mxu1 %v17355_v3 }
  0x55   :  { %16768 = vmatpush3.bf16.msra.mxu0 %v17686_v59 }
  0x56   :  { %16769 = vmatprep.subr.bf16.mxu0 %v17355_v3 }
  0x57   :  { %16804 = vmatpush3.bf16.msra.mxu1 %v17699_v8 }
  0x58   :  { %15599 = vmatmul.mubr.f32.vlgmr.msra.gmra.mrb[2].mxu0 %v17469_v40  ;;  %16805 = vmatprep.subr.bf16.mxu1 %v17355_v3 }
  0x59   :  { %16771 = vmatpush3.bf16.msra.mxu0 %v17782_v48  ;;  %15609 = vmatprep.mubr.msk.f32.mxu0 %vm17356_vm0, %v17357_v15 }
  0x5a   :  { %15665 = vmatmul.mubr.f32.vlgmr.msra.gmra.mrb[2].mxu1 %v17469_v40  ;;  %16772 = vmatprep.subr.bf16.mxu0 %v17355_v3 }
  0x5b   :  { %16807 = vmatpush3.bf16.msra.mxu1 %v17790_v32  ;;  %15675 = vmatprep.mubr.msk.f32.mxu1 %vm17356_vm0, %v17357_v15 }
  0x5c   :  { %16808 = vmatprep.subr.bf16.mxu1 %v17355_v3 }
  0x5d   :  { %16774 = vmatpush3.bf16.msra.mxu0 %v17799_v30 }
  0x5e   :  { %16775 = vmatprep.subr.bf16.mxu0 %v17355_v3 }
  0x5f   :  { %16810 = vmatpush3.bf16.msra.mxu1 %v17810_v31 }
  0x60   :  { %15610 = vmatmul.mubr.f32.vlgmr.msra.gmra.mrb[2].mxu0 %v17438_v25  ;;  %16811 = vmatprep.subr.bf16.mxu1 %v17355_v3 }
  0x61   :  { %16777 = vmatpush3.bf16.msra.mxu0 %v17661_v46  ;;  %15620 = vmatprep.mubr.msk.f32.mxu0 %vm17356_vm0, %v17357_v15 }
  0x62   :  { %15676 = vmatmul.mubr.f32.vlgmr.msra.gmra.mrb[2].mxu1 %v17438_v25  ;;  %16778 = vmatprep.subr.bf16.mxu0 %v17355_v3 }
  0x63   :  { %16813 = vmatpush3.bf16.msra.mxu1 %v17673_v51  ;;  %15686 = vmatprep.mubr.msk.f32.mxu1 %vm17356_vm0, %v17357_v15 }
  0x64   :  { %16814 = vmatprep.subr.bf16.mxu1 %v17355_v3 }
  0x65   :  { %16780 = vmatpush3.bf16.msra.mxu0 %v17686_v59 }
  0x66   :  { %15689 = vmatprep.subr.mxu0 %v17357_v15 }
  0x67   :  { %16816 = vmatpush3.bf16.msra.mxu1 %v17699_v8 }
  0x68   :  { %15621 = vmatmul.mubr.f32.vlgmr.msra.gmra.mrb[2].mxu0 %v17438_v25  ;;  %15719 = vmatprep.subr.mxu1 %v17357_v15 }
  0x69   :  { %15691 = vmatprep.mubr.msk.f32.mxu0 %vm17356_vm0, %v17357_v15 }
  0x6a   :  { %15687 = vmatmul.mubr.f32.vlgmr.msra.gmra.mrb[2].mxu1 %v17438_v25 }
  0x6b   :  { %15721 = vmatprep.mubr.msk.f32.mxu1 %vm17356_vm0, %v17357_v15 }
 0x10b   :  { %v17839_v40 = vpop.f32.mrb[0].mxu0 }
 0x10c   :  { %1989 = vrot.lane.b32.xlu0 %v17839_v40, %s17358_s1  ;;  %v15490_v35 = vpop.f32.mrb[1].mxu0  ;;  %v1992_v42 = vsel %vm1991_vm2, %v17839_v40, 0 }
 0x10d   :  { %v17843_v36 = vpop.f32.mrb[0].mxu1  ;;  %v17857_v43 = vand.u32 4294901760, %v1992_v42 }
 0x10e   :  { %v15556_v37 = vpop.f32.mrb[1].mxu1  ;;  %v2445_v44 = vsel %vm1991_vm2, %v17843_v36, 0 }
 0x10f   :  { %v2063_v45 = vsub.f32 %v1992_v42, %v17857_v43  ;;  %v17862_v49 = vand.u32 4294901760, %v2445_v44 }
 0x110   :  { %2443 = vrot.lane.b32.xlu0 %v17843_v36, %s17358_s1 }
 0x111   :  { %v2064_v50 = vand.u32 4294901760, %v2063_v45  ;;  %v2516_v52 = vsub.f32 %v2445_v44, %v17862_v49 }
 0x113   :  { %v2517_v54 = vand.u32 4294901760, %v2516_v52  ;;  %v2065_v61 = vsub.f32 %v2063_v45, %v2064_v50 }
 0x115   :  { %v2066_v11 = vand.u32 4294901760, %v2065_v61  ;;  %v2518_v13 = vsub.f32 %v2516_v52, %v2517_v54 }
 0x117   :  { %v2519_v27 = vand.u32 4294901760, %v2518_v13 }
 0x13b   :  { %v17847_v38 = vpop.f32.mrb[2].mxu0 }
 0x13c   :  { %2896 = vrot.lane.b32.xlu1 %v17847_v38, %s17358_s1  ;;  %v15622_v25 = vpop.f32.mrb[3].mxu0  ;;  %v2898_v42 = vsel %vm1991_vm2, %v17847_v38, 0 }
 0x13d   :  { %v17851_v39 = vpop.f32.mrb[2].mxu1  ;;  %v17896_v44 = vand.u32 4294901760, %v2898_v42 }
 0x13e   :  { %v15688_v41 = vpop.f32.mrb[3].mxu1 }
 0x140   :  { %3349 = vrot.lane.b32.xlu1 %v17851_v39, %s17358_s1 }
 0x17e   :  { %v1990_v53 = vpop.permute.xlu0 %1989 }
 0x17f   :  { %v1994_v55 = vsel %vm1991_vm2, %v1990_v53, 0 }
 0x180   :  { %v1997_v62 = vand.u32 4294901760, %v1994_v55 }
 0x182   :  { %v2074_v63 = vsub.f32 %v1994_v55, %v1997_v62  ;;  %15690 = vmatpush3.xpose.msra.mxu0 %v1997_v62  ;;  %v2444_v7 = vpop.permute.xlu0 %2443 }
 0x183   :  { %v2447_v10 = vsel %vm1991_vm2, %v2444_v7, 0  ;;  %15694 = vmatprep.subr.mxu0 %v17357_v15 }
 0x184   :  { %v2075_v14 = vand.u32 4294901760, %v2074_v63  ;;  %v2450_v18 = vand.u32 4294901760, %v2447_v10 }
 0x185   :  { %15692 = vmatmul.mubr.f32.vlgmr.msra.gmra.mrb[4].mxu0 %v2066_v11 }
 0x186   :  { %v2076_v22 = vsub.f32 %v2074_v63, %v2075_v14  ;;  %v2527_v26 = vsub.f32 %v2447_v10, %v2450_v18  ;;  %15720 = vmatpush3.xpose.msra.mxu1 %v2450_v18  ;;  %15696 = vmatprep.mubr.msk.f32.mxu0 %vm17356_vm0, %v17357_v15 }
 0x187   :  { %15724 = vmatprep.subr.mxu1 %v17357_v15 }
 0x188   :  { %v2077_v35 = vand.u32 4294901760, %v2076_v22  ;;  %v2528_v37 = vand.u32 4294901760, %v2527_v26 }
 0x189   :  { %15722 = vmatmul.mubr.f32.vlgmr.msra.gmra.mrb[4].mxu1 %v2519_v27 }
 0x18a   :  { %v2529_v25 = vsub.f32 %v2527_v26, %v2528_v37  ;;  %15695 = vmatpush3.xpose.msra.mxu0 %v2077_v35  ;;  %15726 = vmatprep.mubr.msk.f32.mxu1 %vm17356_vm0, %v17357_v15 }
 0x18b   :  { %15699 = vmatprep.subr.mxu0 %v17357_v15 }
 0x18c   :  { %v2530_v41 = vand.u32 4294901760, %v2529_v25 }
 0x18d   :  { %15697 = vmatmul.mubr.f32.vlgmr.msra.gmra.mrb[4].mxu0 %v17857_v43 }
 0x18e   :  { %15700 = vmatpush3.xpose.msra.mxu0 %v2074_v63  ;;  %15725 = vmatpush3.xpose.msra.mxu1 %v2530_v41 }
 0x18f   :  { %15729 = vmatprep.subr.mxu1 %v17357_v15  ;;  %15701 = vmatprep.mubr.msk.f32.mxu0 %vm17356_vm0, %v17357_v15 }
 0x190   :  { %15704 = vmatprep.subr.mxu0 %v17357_v15 }
 0x191   :  { %15727 = vmatmul.mubr.f32.vlgmr.msra.gmra.mrb[4].mxu1 %v17862_v49 }
 0x192   :  { %15730 = vmatpush3.xpose.msra.mxu1 %v2527_v26  ;;  %15731 = vmatprep.mubr.msk.f32.mxu1 %vm17356_vm0, %v17357_v15 }
 0x193   :  { %15734 = vmatprep.subr.mxu1 %v17357_v15 }
 0x195   :  { %15702 = vmatmul.mubr.f32.vlgmr.msra.gmra.mrb[4].mxu0 %v2063_v45  ;;  %v3351_v45 = vsel %vm1991_vm2, %v17851_v39, 0 }
 0x196   :  { %15705 = vmatpush3.xpose.msra.mxu0 %v1997_v62  ;;  %15706 = vmatprep.mubr.msk.f32.mxu0 %vm17356_vm0, %v17357_v15 }
 0x197   :  { %15709 = vmatprep.subr.mxu0 %v17357_v15 }
 0x199   :  { %15732 = vmatmul.mubr.f32.vlgmr.msra.gmra.mrb[4].mxu1 %v2516_v52  ;;  %v17905_v52 = vand.u32 4294901760, %v3351_v45 }
 0x19a   :  { %15735 = vmatpush3.xpose.msra.mxu1 %v2450_v18  ;;  %15736 = vmatprep.mubr.msk.f32.mxu1 %vm17356_vm0, %v17357_v15 }
 0x19b   :  { %15739 = vmatprep.subr.mxu1 %v17357_v15 }
 0x19d   :  { %15707 = vmatmul.mubr.f32.vlgmr.msra.gmra.mrb[4].mxu0 %v2064_v50  ;;  %v2969_v50 = vsub.f32 %v2898_v42, %v17896_v44  ;;  %v42_v42 = vld [vmem:[%s18853_s4] sm:$0xff] }
 0x19e   :  { %15710 = vmatpush3.xpose.msra.mxu0 %v2075_v14  ;;  %15711 = vmatprep.mubr.msk.f32.mxu0 %vm17356_vm0, %v17357_v15 }
 0x19f   :  { %15714 = vmatprep.subr.mxu0 %v17357_v15  ;;  %v2970_v53 = vand.u32 4294901760, %v2969_v50 }
 0x1a1   :  { %15737 = vmatmul.mubr.f32.vlgmr.msra.gmra.mrb[4].mxu1 %v2517_v54  ;;  %v3422_v54 = vsub.f32 %v3351_v45, %v17905_v52  ;;  %v2971_v63 = vsub.f32 %v2969_v50, %v2970_v53 }
 0x1a2   :  { %15740 = vmatpush3.xpose.msra.mxu1 %v2528_v37  ;;  %15741 = vmatprep.mubr.msk.f32.mxu1 %vm17356_vm0, %v17357_v15 }
 0x1a3   :  { %15744 = vmatprep.subr.mxu1 %v17357_v15  ;;  %v3423_v61 = vand.u32 4294901760, %v3422_v54 }
 0x1a5   :  { %15712 = vmatmul.mubr.f32.vlgmr.msra.gmra.mrb[4].mxu0 %v17857_v43  ;;  %v3424_v14 = vsub.f32 %v3422_v54, %v3423_v61 }
 0x1a6   :  { %15715 = vmatpush3.xpose.msra.mxu0 %v1997_v62  ;;  %15716 = vmatprep.mubr.msk.f32.mxu0 %vm17356_vm0, %v17357_v15 }
 0x1a7   :  { %15749 = vmatprep.subr.mxu0 %v17357_v15 }
 0x1a9   :  { %15742 = vmatmul.mubr.f32.vlgmr.msra.gmra.mrb[4].mxu1 %v17862_v49 }
 0x1aa   :  { %15745 = vmatpush3.xpose.msra.mxu1 %v2450_v18  ;;  %15746 = vmatprep.mubr.msk.f32.mxu1 %vm17356_vm0, %v17357_v15 }
 0x1ab   :  { %15779 = vmatprep.subr.mxu1 %v17357_v15 }
 0x1ad   :  { %15717 = vmatmul.mubr.f32.vlgmr.msra.gmra.mrb[4].mxu0 %v17857_v43  ;;  %v2972_v43 = vand.u32 4294901760, %v2971_v63 }
 0x1ae   :  { %v2897_v55 = vpop.permute.xlu1 %2896  ;;  %15751 = vmatprep.mubr.msk.f32.mxu0 %vm17356_vm0, %v17357_v15 }
 0x1af   :  { %v2900_v62 = vsel %vm1991_vm2, %v2897_v55, 0 }
 0x1b0   :  { %v2903_v7 = vand.u32 4294901760, %v2900_v62 }
 0x1b1   :  { %15747 = vmatmul.mubr.f32.vlgmr.msra.gmra.mrb[4].mxu1 %v17862_v49  ;;  %v3425_v49 = vand.u32 4294901760, %v3424_v14 }
 0x1b2   :  { %v2980_v10 = vsub.f32 %v2900_v62, %v2903_v7  ;;  %15750 = vmatpush3.xpose.msra.mxu0 %v2903_v7  ;;  %v3350_v11 = vpop.permute.xlu1 %3349  ;;  %15781 = vmatprep.mubr.msk.f32.mxu1 %vm17356_vm0, %v17357_v15 }
 0x1b3   :  { %v3353_v13 = vsel %vm1991_vm2, %v3350_v11, 0  ;;  %15754 = vmatprep.subr.mxu0 %v17357_v15 }
 0x1b4   :  { %v2981_v18 = vand.u32 4294901760, %v2980_v10  ;;  %v3356_v22 = vand.u32 4294901760, %v3353_v13 }
 0x1b5   :  { %15752 = vmatmul.mubr.f32.vlgmr.msra.gmra.mrb[6].mxu0 %v2972_v43 }
 0x1b6   :  { %v2982_v26 = vsub.f32 %v2980_v10, %v2981_v18  ;;  %v3433_v27 = vsub.f32 %v3353_v13, %v3356_v22  ;;  %15780 = vmatpush3.xpose.msra.mxu1 %v3356_v22  ;;  %15756 = vmatprep.mubr.msk.f32.mxu0 %vm17356_vm0, %v17357_v15 }
 0x1b7   :  { %15784 = vmatprep.subr.mxu1 %v17357_v15 }
 0x1b8   :  { %v2983_v35 = vand.u32 4294901760, %v2982_v26  ;;  %v3434_v37 = vand.u32 4294901760, %v3433_v27 }
 0x1b9   :  { %15782 = vmatmul.mubr.f32.vlgmr.msra.gmra.mrb[6].mxu1 %v3425_v49 }
 0x1ba   :  { %v3435_v25 = vsub.f32 %v3433_v27, %v3434_v37  ;;  %15755 = vmatpush3.xpose.msra.mxu0 %v2983_v35  ;;  %15786 = vmatprep.mubr.msk.f32.mxu1 %vm17356_vm0, %v17357_v15 }
 0x1bb   :  { %15759 = vmatprep.subr.mxu0 %v17357_v15 }
 0x1bc   :  { %v3436_v41 = vand.u32 4294901760, %v3435_v25 }
 0x1bd   :  { %15757 = vmatmul.mubr.f32.vlgmr.msra.gmra.mrb[6].mxu0 %v17896_v44 }
 0x1be   :  { %15760 = vmatpush3.xpose.msra.mxu0 %v2980_v10  ;;  %15785 = vmatpush3.xpose.msra.mxu1 %v3436_v41 }
 0x1bf   :  { %15789 = vmatprep.subr.mxu1 %v17357_v15  ;;  %15761 = vmatprep.mubr.msk.f32.mxu0 %vm17356_vm0, %v17357_v15 }
 0x1c0   :  { %15764 = vmatprep.subr.mxu0 %v17357_v15 }
 0x1c1   :  { %15787 = vmatmul.mubr.f32.vlgmr.msra.gmra.mrb[6].mxu1 %v17905_v52 }
 0x1c2   :  { %15790 = vmatpush3.xpose.msra.mxu1 %v3433_v27  ;;  %15791 = vmatprep.mubr.msk.f32.mxu1 %vm17356_vm0, %v17357_v15 }
 0x1c3   :  { %15794 = vmatprep.subr.mxu1 %v17357_v15 }
 0x1c5   :  { %15762 = vmatmul.mubr.f32.vlgmr.msra.gmra.mrb[6].mxu0 %v2969_v50 }
 0x1c6   :  { %15765 = vmatpush3.xpose.msra.mxu0 %v2903_v7  ;;  %15766 = vmatprep.mubr.msk.f32.mxu0 %vm17356_vm0, %v17357_v15 }
 0x1c7   :  { %15769 = vmatprep.subr.mxu0 %v17357_v15 }
 0x1c9   :  { %15792 = vmatmul.mubr.f32.vlgmr.msra.gmra.mrb[6].mxu1 %v3422_v54 }
 0x1ca   :  { %15795 = vmatpush3.xpose.msra.mxu1 %v3356_v22  ;;  %15796 = vmatprep.mubr.msk.f32.mxu1 %vm17356_vm0, %v17357_v15 }
 0x1cb   :  { %15799 = vmatprep.subr.mxu1 %v17357_v15 }
 0x1cd   :  { %15767 = vmatmul.mubr.f32.vlgmr.msra.gmra.mrb[6].mxu0 %v2970_v53 }
 0x1ce   :  { %15770 = vmatpush3.xpose.msra.mxu0 %v2981_v18  ;;  %15771 = vmatprep.mubr.msk.f32.mxu0 %vm17356_vm0, %v17357_v15 }
 0x1cf   :  { %15774 = vmatprep.subr.mxu0 %v17357_v15 }
 0x1d1   :  { %15797 = vmatmul.mubr.f32.vlgmr.msra.gmra.mrb[6].mxu1 %v3423_v61 }
 0x1d2   :  { %15800 = vmatpush3.xpose.msra.mxu1 %v3434_v37  ;;  %15801 = vmatprep.mubr.msk.f32.mxu1 %vm17356_vm0, %v17357_v15 }
 0x1d3   :  { %15804 = vmatprep.subr.mxu1 %v17357_v15 }
 0x1d5   :  { %15772 = vmatmul.mubr.f32.vlgmr.msra.gmra.mrb[6].mxu0 %v17896_v44 }
 0x1d6   :  { %15775 = vmatpush3.xpose.msra.mxu0 %v2903_v7  ;;  %15776 = vmatprep.mubr.msk.f32.mxu0 %vm17356_vm0, %v17357_v15 }
 0x1d7   :  { %15809 = vmatprep.subr.mxu0 %v17357_v15 }
 0x1d9   :  { %15802 = vmatmul.mubr.f32.vlgmr.msra.gmra.mrb[6].mxu1 %v17905_v52 }
 0x1da   :  { %15805 = vmatpush3.xpose.msra.mxu1 %v3356_v22  ;;  %15806 = vmatprep.mubr.msk.f32.mxu1 %vm17356_vm0, %v17357_v15 }
 0x1db   :  { %15839 = vmatprep.subr.mxu1 %v17357_v15 }
 0x1dd   :  { %15777 = vmatmul.mubr.f32.vlgmr.msra.gmra.mrb[6].mxu0 %v17896_v44 }
 0x1de   :  { %15811 = vmatprep.mubr.msk.f32.mxu0 %vm17356_vm0, %v17357_v15 }
 0x1e1   :  { %15807 = vmatmul.mubr.f32.vlgmr.msra.gmra.mrb[6].mxu1 %v17905_v52 }
 0x1e2   :  { %15841 = vmatprep.mubr.msk.f32.mxu1 %vm17356_vm0, %v17357_v15 }
 0x280   :  { %v2438_v45 = vpop.f32.mrb[4].mxu0 }
 0x281   :  { %v16961_v50 = vadd.f32 %v2438_v45, %v42_v42  ;;  %v15718_v53 = vpop.f32.mrb[5].mxu0 }
 0x283   :  { %v3801_v54 = vsel %vm1991_vm2, %v16961_v50, -inf }
 0x284   :  { %v2891_v55 = vpop.f32.mrb[4].mxu1  ;;  %3802 = vmax.xlane.f32.xlu0 %v3801_v54 }
 0x285   :  { %v16962_v44 = vadd.f32 %v2891_v55, %v42_v42  ;;  %v15748_v61 = vpop.f32.mrb[5].mxu1 }
 0x287   :  { %v3804_v62 = vsel %vm1991_vm2, %v16962_v44, -inf }
 0x288   :  { %3805 = vmax.xlane.f32.xlu1 %v3804_v62 }
 0x2b0   :  { %v3344_v52 = vpop.f32.mrb[6].mxu0 }
 0x2b1   :  { %v16963_v63 = vadd.f32 %v3344_v52, %v42_v42  ;;  %v15778_v7 = vpop.f32.mrb[7].mxu0 }
 0x2b3   :  { %v3807_v10 = vsel %vm1991_vm2, %v16963_v63, -inf }
 0x2b4   :  { %v3797_v11 = vpop.f32.mrb[6].mxu1  ;;  %3808 = vmax.xlane.f32.xlu0 %v3807_v10 }
 0x2b5   :  { %v16964_v13 = vadd.f32 %v3797_v11, %v42_v42  ;;  %v15808_v43 = vpop.f32.mrb[7].mxu1 }
 0x2b7   :  { %v3810_v14 = vsel %vm1991_vm2, %v16964_v13, -inf }
 0x2b8   :  { %3811 = vmax.xlane.f32.xlu0 %v3810_v14 }
 0x311   :  { %v3803_v18 = vpop.xlane.xlu0 %3802 }
 0x312   :  { %v3813_v22 = vsub.f32 %v16961_v50, %v3803_v18 }
 0x314   :  { %v3817_v26 = vmul.f32 1.442695, %v3813_v22 }
 0x315   :  { %v3806_v27 = vpop.xlane.xlu1 %3805 }
 0x316   :  { %17297 = vpow2.f32 %v3817_v26  ;;  %v3814_v49 = vsub.f32 %v16962_v44, %v3806_v27 }
 0x318   :  { %v3819_v35 = vmul.f32 1.442695, %v3814_v49 }
 0x31a   :  { %17299 = vpow2.f32 %v3819_v35 }
 0x320   :  { %v17298_v37 = vpop.eup %17297 }
 0x321   :  { %v3825_v25 = vsel %vm1991_vm2, %v17298_v37, 0.0 }
 0x322   :  { %3826 = vadd.xlane.f32.xlu1 %v3825_v25 }
 0x324   :  { %v17300_v41 = vpop.eup %17299 }
 0x325   :  { %v3828_v45 = vsel %vm1991_vm2, %v17300_v41, 0.0 }
 0x326   :  { %3829 = vadd.xlane.f32.xlu0 %v3828_v45 }
 0x333   :  { %3845 = vrot.lane.b32.xlu1 %v17839_v40, %s17359_s29 }
 0x33c   :  { %4297 = vrot.lane.b32.xlu0 %v17843_v36, %s17359_s29 }
 0x341   :  { %v3809_v42 = vpop.xlane.xlu0 %3808 }
 0x342   :  { %v3815_v50 = vsub.f32 %v16963_v63, %v3809_v42 }
 0x344   :  { %v3821_v53 = vmul.f32 1.442695, %v3815_v50 }
 0x345   :  { %v3812_v54 = vpop.xlane.xlu0 %3811 }
 0x346   :  { %v3816_v55 = vsub.f32 %v16964_v13, %v3812_v54  ;;  %17301 = vpow2.f32 %v3821_v53 }
 0x348   :  { %v3823_v44 = vmul.f32 1.442695, %v3816_v55 }
 0x34a   :  { %17303 = vpow2.f32 %v3823_v44 }
 0x350   :  { %v17976_v61 = vpop.eup %17301 }
 0x351   :  { %v3831_v62 = vsel %vm1991_vm2, %v17976_v61, 0.0 }
 0x354   :  { %v17980_v52 = vpop.eup %17303 }
 0x355   :  { %v3834_v40 = vsel %vm1991_vm2, %v17980_v52, 0.0 }
 0x357   :  { %3832 = vadd.xlane.f32.xlu1 %v3831_v62 }
 0x35b   :  { %3835 = vadd.xlane.f32.xlu0 %v3834_v40 }
 0x368   :  { %4749 = vrot.lane.b32.xlu1 %v17847_v38, %s17359_s29 }
 0x371   :  { %5201 = vrot.lane.b32.xlu0 %v17851_v39, %s17359_s29 }
 0x3af   :  { %v3827_v36 = vpop.xlane.xlu1 %3826 }
 0x3b0   :  { %17305 = vrcp.f32 %v3827_v36 }
 0x3b3   :  { %v3846_v63 = vpop.permute.xlu1 %3845  ;;  %v3830_v7 = vpop.xlane.xlu0 %3829 }
 0x3b4   :  { %v17988_v10 = vand.u32 4294901760, %v3846_v63  ;;  %17307 = vrcp.f32 %v3830_v7 }
 0x3b6   :  { %15810 = vmatpush3.msra.mxu0 %v17988_v10  ;;  %v3929_v39 = vsub.f32 %v3846_v63, %v17988_v10 }
 0x3b7   :  { %v4298_v11 = vpop.permute.xlu0 %4297  ;;  %15814 = vmatprep.subr.mxu0 %v17357_v15 }
 0x3b8   :  { %v17992_v13 = vand.u32 4294901760, %v4298_v11  ;;  %v3930_v26 = vand.u32 4294901760, %v3929_v39 }
 0x3ba   :  { %v17306_v43 = vpop.eup %17305  ;;  %15840 = vmatpush3.msra.mxu1 %v17992_v13  ;;  %v4381_v49 = vsub.f32 %v4298_v11, %v17992_v13 }
 0x3bb   :  { %v3838_v38 = vmul.f32 %v17306_v43, %v17298_v37  ;;  %15844 = vmatprep.subr.mxu1 %v17357_v15  ;;  %v3931_v37 = vsub.f32 %v3929_v39, %v3930_v26 }
 0x3bc   :  { %v4382_v50 = vand.u32 4294901760, %v4381_v49 }
 0x3bd   :  { %v3849_v14 = vsel %vm1991_vm2, %v3838_v38, 0  ;;  %v3932_v62 = vand.u32 4294901760, %v3931_v37 }
 0x3be   :  { %v17308_v18 = vpop.eup %17307  ;;  %v17998_v22 = vand.u32 4294901760, %v3849_v14  ;;  %v4383_v40 = vsub.f32 %v4381_v49, %v4382_v50 }
 0x3bf   :  { %v3840_v27 = vmul.f32 %v17308_v18, %v17300_v41 }
 0x3c0   :  { %v3918_v35 = vsub.f32 %v3849_v14, %v17998_v22  ;;  %v4384_v63 = vand.u32 4294901760, %v4383_v40 }
 0x3c1   :  { %v4301_v25 = vsel %vm1991_vm2, %v3840_v27, 0 }
 0x3c2   :  { %v3919_v45 = vand.u32 4294901760, %v3918_v35  ;;  %v18003_v42 = vand.u32 4294901760, %v4301_v25 }
 0x3c4   :  { %v3920_v53 = vsub.f32 %v3918_v35, %v3919_v45  ;;  %v4370_v54 = vsub.f32 %v4301_v25, %v18003_v42 }
 0x3c6   :  { %v3921_v55 = vand.u32 4294901760, %v3920_v53  ;;  %v4371_v44 = vand.u32 4294901760, %v4370_v54 }
 0x3c8   :  { %15812 = vmatmul.mubr.f32.vlgmr.msra.gmra.mrb[8].mxu0 %v3921_v55  ;;  %v4372_v41 = vsub.f32 %v4370_v54, %v4371_v44 }
 0x3c9   :  { %15815 = vmatpush3.msra.mxu0 %v3932_v62  ;;  %15816 = vmatprep.mubr.msk.f32.mxu0 %vm17356_vm0, %v17357_v15 }
 0x3ca   :  { %v4373_v36 = vand.u32 4294901760, %v4372_v41  ;;  %15819 = vmatprep.subr.mxu0 %v17357_v15 }
 0x3cc   :  { %15842 = vmatmul.mubr.f32.vlgmr.msra.gmra.mrb[8].mxu1 %v4373_v36 }
 0x3cd   :  { %15845 = vmatpush3.msra.mxu1 %v4384_v63  ;;  %15846 = vmatprep.mubr.msk.f32.mxu1 %vm17356_vm0, %v17357_v15 }
 0x3ce   :  { %15849 = vmatprep.subr.mxu1 %v17357_v15 }
 0x3d0   :  { %15817 = vmatmul.mubr.f32.vlgmr.msra.gmra.mrb[8].mxu0 %v17998_v22 }
 0x3d1   :  { %15820 = vmatpush3.msra.mxu0 %v3929_v39  ;;  %15821 = vmatprep.mubr.msk.f32.mxu0 %vm17356_vm0, %v17357_v15 }
 0x3d2   :  { %15824 = vmatprep.subr.mxu0 %v17357_v15 }
 0x3d4   :  { %15847 = vmatmul.mubr.f32.vlgmr.msra.gmra.mrb[8].mxu1 %v18003_v42 }
 0x3d5   :  { %15850 = vmatpush3.msra.mxu1 %v4381_v49  ;;  %15851 = vmatprep.mubr.msk.f32.mxu1 %vm17356_vm0, %v17357_v15 }
 0x3d6   :  { %15854 = vmatprep.subr.mxu1 %v17357_v15 }
 0x3d8   :  { %15822 = vmatmul.mubr.f32.vlgmr.msra.gmra.mrb[8].mxu0 %v3918_v35 }
 0x3d9   :  { %15825 = vmatpush3.msra.mxu0 %v17988_v10  ;;  %15826 = vmatprep.mubr.msk.f32.mxu0 %vm17356_vm0, %v17357_v15 }
 0x3da   :  { %15829 = vmatprep.subr.mxu0 %v17357_v15 }
 0x3dc   :  { %15852 = vmatmul.mubr.f32.vlgmr.msra.gmra.mrb[8].mxu1 %v4370_v54 }
 0x3dd   :  { %15855 = vmatpush3.msra.mxu1 %v17992_v13  ;;  %15856 = vmatprep.mubr.msk.f32.mxu1 %vm17356_vm0, %v17357_v15 }
 0x3de   :  { %15859 = vmatprep.subr.mxu1 %v17357_v15 }
 0x3e0   :  { %15827 = vmatmul.mubr.f32.vlgmr.msra.gmra.mrb[8].mxu0 %v3919_v45 }
 0x3e1   :  { %15830 = vmatpush3.msra.mxu0 %v3930_v26  ;;  %15831 = vmatprep.mubr.msk.f32.mxu0 %vm17356_vm0, %v17357_v15 }
 0x3e2   :  { %15834 = vmatprep.subr.mxu0 %v17357_v15 }
 0x3e4   :  { %v3833_v7 = vpop.xlane.xlu1 %3832  ;;  %15857 = vmatmul.mubr.f32.vlgmr.msra.gmra.mrb[8].mxu1 %v4371_v44 }
 0x3e5   :  { %17309 = vrcp.f32 %v3833_v7  ;;  %15860 = vmatpush3.msra.mxu1 %v4382_v50  ;;  %15861 = vmatprep.mubr.msk.f32.mxu1 %vm17356_vm0, %v17357_v15  ;;  %v37_v7 = vld [vmem:[%s18851_s2] sm:$0xff] }
 0x3e6   :  { %15864 = vmatprep.subr.mxu1 %v17357_v15 }
 0x3e8   :  { %15832 = vmatmul.mubr.f32.vlgmr.msra.gmra.mrb[8].mxu0 %v17998_v22  ;;  %v3836_v11 = vpop.xlane.xlu0 %3835  ;;  %v4750_v43 = vpop.permute.xlu1 %4749 }
 0x3e9   :  { %15835 = vmatpush3.msra.mxu0 %v17988_v10  ;;  %17311 = vrcp.f32 %v3836_v11  ;;  %15836 = vmatprep.mubr.msk.f32.mxu0 %vm17356_vm0, %v17357_v15  ;;  %v18039_v38 = vand.u32 4294901760, %v4750_v43  ;;  %v18105_v11 = vand.u32 4294901760, %v37_v7 }
 0x3ea   :  { %15869 = vmatprep.subr.mxu0 %v17357_v15 }
 0x3eb   :  { %v4833_v18 = vsub.f32 %v4750_v43, %v18039_v38  ;;  %v38_v43 = vld [vmem:[%s18851_s2 + $0x8] sm:$0xff] }
 0x3ec   :  { %15862 = vmatmul.mubr.f32.vlgmr.msra.gmra.mrb[8].mxu1 %v18003_v42  ;;  %v5202_v39 = vpop.permute.xlu0 %5201 }
 0x3ed   :  { %15865 = vmatpush3.msra.mxu1 %v17992_v13  ;;  %15866 = vmatprep.mubr.msk.f32.mxu1 %vm17356_vm0, %v17357_v15  ;;  %v18048_v26 = vand.u32 4294901760, %v5202_v39  ;;  %v4834_v35 = vand.u32 4294901760, %v4833_v18 }
 0x3ee   :  { %15899 = vmatprep.subr.mxu1 %v17357_v15 }
 0x3ef   :  { %v17310_v10 = vpop.eup %17309  ;;  %v5285_v25 = vsub.f32 %v5202_v39, %v18048_v26  ;;  %v4835_v53 = vsub.f32 %v4833_v18, %v4834_v35  ;;  %v18117_v39 = vsub.f32 %v37_v7, %v18105_v11  ;;  %v40_v7 = vld [vmem:[%s18851_s2 + $0x18] sm:$0xff] }
 0x3f0   :  { %v3842_v14 = vmul.f32 %v17310_v10, %v17976_v61  ;;  %15837 = vmatmul.mubr.f32.vlgmr.msra.gmra.mrb[8].mxu0 %v17998_v22 }
 0x3f1   :  { %15870 = vmatpush3.msra.mxu0 %v18039_v38  ;;  %15871 = vmatprep.mubr.msk.f32.mxu0 %vm17356_vm0, %v17357_v15  ;;  %v5286_v54 = vand.u32 4294901760, %v5285_v25  ;;  %v4836_v40 = vand.u32 4294901760, %v4835_v53 }
 0x3f2   :  { %15874 = vmatprep.subr.mxu0 %v17357_v15  ;;  %v4753_v13 = vsel %vm1991_vm2, %v3842_v14, 0 }
 0x3f3   :  { %v17312_v27 = vpop.eup %17311  ;;  %v4821_v49 = vand.u32 4294901760, %v4753_v13 }
 0x3f4   :  { %v3844_v61 = vmul.f32 %v17312_v27, %v17980_v52  ;;  %15867 = vmatmul.mubr.f32.vlgmr.msra.gmra.mrb[8].mxu1 %v18003_v42  ;;  %v5287_v42 = vsub.f32 %v5285_v25, %v5286_v54 }
 0x3f5   :  { %15900 = vmatpush3.msra.mxu1 %v18048_v26  ;;  %v4822_v22 = vsub.f32 %v4753_v13, %v4821_v49  ;;  %15901 = vmatprep.mubr.msk.f32.mxu1 %vm17356_vm0, %v17357_v15 }
 0x3f6   :  { %15904 = vmatprep.subr.mxu1 %v17357_v15  ;;  %v5205_v45 = vsel %vm1991_vm2, %v3844_v61, 0  ;;  %v5288_v63 = vand.u32 4294901760, %v5287_v42 }
 0x3f7   :  { %v4823_v37 = vand.u32 4294901760, %v4822_v22  ;;  %v5273_v50 = vand.u32 4294901760, %v5205_v45 }
 0x3f9   :  { %v4824_v55 = vsub.f32 %v4822_v22, %v4823_v37  ;;  %v5274_v52 = vsub.f32 %v5205_v45, %v5273_v50 }
 0x3fb   :  { %v4825_v44 = vand.u32 4294901760, %v4824_v55  ;;  %v5275_v62 = vand.u32 4294901760, %v5274_v52 }
 0x3fd   :  { %15872 = vmatmul.mubr.f32.vlgmr.msra.gmra.mrb[10].mxu0 %v4825_v44  ;;  %v5276_v41 = vsub.f32 %v5274_v52, %v5275_v62 }
 0x3fe   :  { %15875 = vmatpush3.msra.mxu0 %v4836_v40  ;;  %15876 = vmatprep.mubr.msk.f32.mxu0 %vm17356_vm0, %v17357_v15 }
 0x3ff   :  { %v5277_v36 = vand.u32 4294901760, %v5276_v41  ;;  %15879 = vmatprep.subr.mxu0 %v17357_v15 }
 0x401   :  { %15902 = vmatmul.mubr.f32.vlgmr.msra.gmra.mrb[10].mxu1 %v5277_v36  ;;  %v39_v36 = vld [vmem:[%s18851_s2 + $0x10] sm:$0xff] }
 0x402   :  { %15905 = vmatpush3.msra.mxu1 %v5288_v63  ;;  %15906 = vmatprep.mubr.msk.f32.mxu1 %vm17356_vm0, %v17357_v15  ;;  %v18186_v63 = vand.u32 4294901760, %v39_v36 }
 0x403   :  { %15909 = vmatprep.subr.mxu1 %v17357_v15 }
 0x405   :  { %15877 = vmatmul.mubr.f32.vlgmr.msra.gmra.mrb[10].mxu0 %v4821_v49 }
 0x406   :  { %15880 = vmatpush3.msra.mxu0 %v4833_v18  ;;  %15881 = vmatprep.mubr.msk.f32.mxu0 %vm17356_vm0, %v17357_v15 }
 0x407   :  { %15884 = vmatprep.subr.mxu0 %v17357_v15 }
 0x409   :  { %15907 = vmatmul.mubr.f32.vlgmr.msra.gmra.mrb[10].mxu1 %v5273_v50 }
 0x40a   :  { %15910 = vmatpush3.msra.mxu1 %v5285_v25  ;;  %15911 = vmatprep.mubr.msk.f32.mxu1 %vm17356_vm0, %v17357_v15 }
 0x40b   :  { %15914 = vmatprep.subr.mxu1 %v17357_v15 }
 0x40d   :  { %15882 = vmatmul.mubr.f32.vlgmr.msra.gmra.mrb[10].mxu0 %v4822_v22 }
 0x40e   :  { %15885 = vmatpush3.msra.mxu0 %v18039_v38  ;;  %15886 = vmatprep.mubr.msk.f32.mxu0 %vm17356_vm0, %v17357_v15 }
 0x40f   :  { %15889 = vmatprep.subr.mxu0 %v17357_v15 }
 0x411   :  { %15912 = vmatmul.mubr.f32.vlgmr.msra.gmra.mrb[10].mxu1 %v5274_v52 }
 0x412   :  { %15915 = vmatpush3.msra.mxu1 %v18048_v26  ;;  %15916 = vmatprep.mubr.msk.f32.mxu1 %vm17356_vm0, %v17357_v15 }
 0x413   :  { %15919 = vmatprep.subr.mxu1 %v17357_v15 }
 0x415   :  { %15887 = vmatmul.mubr.f32.vlgmr.msra.gmra.mrb[10].mxu0 %v4823_v37 }
 0x416   :  { %15890 = vmatpush3.msra.mxu0 %v4834_v35  ;;  %15891 = vmatprep.mubr.msk.f32.mxu0 %vm17356_vm0, %v17357_v15 }
 0x417   :  { %15894 = vmatprep.subr.mxu0 %v17357_v15 }
 0x419   :  { %15917 = vmatmul.mubr.f32.vlgmr.msra.gmra.mrb[10].mxu1 %v5275_v62 }
 0x41a   :  { %15920 = vmatpush3.msra.mxu1 %v5286_v54  ;;  %15921 = vmatprep.mubr.msk.f32.mxu1 %vm17356_vm0, %v17357_v15 }
 0x41b   :  { %15924 = vmatprep.subr.mxu1 %v17357_v15 }
 0x41d   :  { %15892 = vmatmul.mubr.f32.vlgmr.msra.gmra.mrb[10].mxu0 %v4821_v49 }
 0x41e   :  { %15895 = vmatpush3.msra.mxu0 %v18039_v38  ;;  %15896 = vmatprep.mubr.msk.f32.mxu0 %vm17356_vm0, %v17357_v15  ;;  %v18112_v38 = vand.u32 4294901760, %v38_v43 }
 0x41f   :  { %15929 = vmatprep.subr.mxu0 %v17357_v15 }
 0x420   :  { %v18124_v13 = vsub.f32 %v38_v43, %v18112_v38  ;;  %v18196_v43 = vand.u32 4294901760, %v40_v7 }
 0x421   :  { %15922 = vmatmul.mubr.f32.vlgmr.msra.gmra.mrb[10].mxu1 %v5273_v50 }
 0x422   :  { %15925 = vmatpush3.msra.mxu1 %v18048_v26  ;;  %15926 = vmatprep.mubr.msk.f32.mxu1 %vm17356_vm0, %v17357_v15  ;;  %v18121_v26 = vand.u32 4294901760, %v18117_v39  ;;  %v18133_v45 = vand.u32 4294901760, %v18124_v13 }
 0x423   :  { %15959 = vmatprep.subr.mxu1 %v17357_v15 }
 0x424   :  { %v5736_v22 = vsub.f32 %v18117_v39, %v18121_v26  ;;  %v6185_v52 = vsub.f32 %v18124_v13, %v18133_v45 }
 0x425   :  { %15897 = vmatmul.mubr.f32.vlgmr.msra.gmra.mrb[10].mxu0 %v4821_v49 }
 0x426   :  { %15931 = vmatprep.mubr.msk.f32.mxu0 %vm17356_vm0, %v17357_v15  ;;  %15930 = vmatpush3.msra.mxu0 %v18105_v11  ;;  %v18138_v55 = vand.u32 4294901760, %v5736_v22  ;;  %v18145_v42 = vand.u32 4294901760, %v6185_v52 }
 0x427   :  { %15934 = vmatprep.subr.mxu0 %v17357_v15 }
 0x429   :  { %15927 = vmatmul.mubr.f32.vlgmr.msra.gmra.mrb[10].mxu1 %v5273_v50 }
 0x42a   :  { %15961 = vmatprep.mubr.msk.f32.mxu1 %vm17356_vm0, %v17357_v15  ;;  %15960 = vmatpush3.msra.mxu1 %v18112_v38 }
 0x42b   :  { %15964 = vmatprep.subr.mxu1 %v17357_v15 }
 0x4c3   :  { %v4293_v10 = vpop.f32.mrb[8].mxu0 }
 0x4c4   :  { %v5654_v14 = vsel %vm1991_vm2, %v4293_v10, 0  ;;  %v15838_v18 = vpop.f32.mrb[9].mxu0  ;;  %v18199_v10 = vsub.f32 %v39_v36, %v18186_v63 }
 0x4c5   :  { %v18126_v27 = vand.u32 4294901760, %v5654_v14 }
 0x4c7   :  { %v5723_v49 = vsub.f32 %v5654_v14, %v18126_v27  ;;  %v4745_v35 = vpop.f32.mrb[8].mxu1 }
 0x4c8   :  { %v6103_v61 = vsel %vm1991_vm2, %v4745_v35, 0  ;;  %v15868_v25 = vpop.f32.mrb[9].mxu1  ;;  %v18208_v35 = vand.u32 4294901760, %v18199_v10 }
 0x4c9   :  { %v5724_v37 = vand.u32 4294901760, %v5723_v49  ;;  %v18135_v50 = vand.u32 4294901760, %v6103_v61 }
 0x4cb   :  { %v5725_v53 = vsub.f32 %v5723_v49, %v5724_v37  ;;  %v6172_v54 = vsub.f32 %v6103_v61, %v18135_v50  ;;  %v18211_v61 = vsub.f32 %v40_v7, %v18196_v43 }
 0x4cd   :  { %v5726_v44 = vand.u32 4294901760, %v5725_v53  ;;  %v6173_v62 = vand.u32 4294901760, %v6172_v54  ;;  %v18225_v52 = vand.u32 4294901760, %v18211_v61 }
 0x4cf   :  { %v6174_v40 = vsub.f32 %v6172_v54, %v6173_v62  ;;  %15932 = vmatmul.mubr.f32.vlgmr.msra.gmra.mrb[12].mxu0 %v5726_v44  ;;  %v7083_v36 = vsub.f32 %v18211_v61, %v18225_v52 }
 0x4d0   :  { %15935 = vmatpush3.msra.mxu0 %v18138_v55  ;;  %15936 = vmatprep.mubr.msk.f32.mxu0 %vm17356_vm0, %v17357_v15 }
 0x4d1   :  { %v6175_v41 = vand.u32 4294901760, %v6174_v40  ;;  %15939 = vmatprep.subr.mxu0 %v17357_v15 }
 0x4d3   :  { %15962 = vmatmul.mubr.f32.vlgmr.msra.gmra.mrb[12].mxu1 %v6175_v41 }
 0x4d4   :  { %15965 = vmatpush3.msra.mxu1 %v18145_v42  ;;  %15966 = vmatprep.mubr.msk.f32.mxu1 %vm17356_vm0, %v17357_v15 }
 0x4d5   :  { %15969 = vmatprep.subr.mxu1 %v17357_v15 }
 0x4d7   :  { %15937 = vmatmul.mubr.f32.vlgmr.msra.gmra.mrb[12].mxu0 %v18126_v27 }
 0x4d8   :  { %15940 = vmatpush3.msra.mxu0 %v18117_v39  ;;  %15941 = vmatprep.mubr.msk.f32.mxu0 %vm17356_vm0, %v17357_v15 }
 0x4d9   :  { %15944 = vmatprep.subr.mxu0 %v17357_v15 }
 0x4db   :  { %15967 = vmatmul.mubr.f32.vlgmr.msra.gmra.mrb[12].mxu1 %v18135_v50 }
 0x4dc   :  { %15970 = vmatpush3.msra.mxu1 %v18124_v13  ;;  %15971 = vmatprep.mubr.msk.f32.mxu1 %vm17356_vm0, %v17357_v15 }
 0x4dd   :  { %15974 = vmatprep.subr.mxu1 %v17357_v15 }
 0x4df   :  { %15942 = vmatmul.mubr.f32.vlgmr.msra.gmra.mrb[12].mxu0 %v5723_v49 }
 0x4e0   :  { %15945 = vmatpush3.msra.mxu0 %v18105_v11  ;;  %15946 = vmatprep.mubr.msk.f32.mxu0 %vm17356_vm0, %v17357_v15 }
 0x4e1   :  { %15949 = vmatprep.subr.mxu0 %v17357_v15 }
 0x4e3   :  { %15972 = vmatmul.mubr.f32.vlgmr.msra.gmra.mrb[12].mxu1 %v6172_v54  ;;  %v6634_v54 = vsub.f32 %v18199_v10, %v18208_v35 }
 0x4e4   :  { %15975 = vmatpush3.msra.mxu1 %v18112_v38  ;;  %15976 = vmatprep.mubr.msk.f32.mxu1 %vm17356_vm0, %v17357_v15 }
 0x4e5   :  { %15979 = vmatprep.subr.mxu1 %v17357_v15  ;;  %v18227_v41 = vand.u32 4294901760, %v6634_v54 }
 0x4e7   :  { %15947 = vmatmul.mubr.f32.vlgmr.msra.gmra.mrb[12].mxu0 %v5724_v37 }
 0x4e8   :  { %15950 = vmatpush3.msra.mxu0 %v18121_v26  ;;  %15951 = vmatprep.mubr.msk.f32.mxu0 %vm17356_vm0, %v17357_v15 }
 0x4e9   :  { %15954 = vmatprep.subr.mxu0 %v17357_v15 }
 0x4eb   :  { %15977 = vmatmul.mubr.f32.vlgmr.msra.gmra.mrb[12].mxu1 %v6173_v62 }
 0x4ec   :  { %15980 = vmatpush3.msra.mxu1 %v18133_v45  ;;  %15981 = vmatprep.mubr.msk.f32.mxu1 %vm17356_vm0, %v17357_v15 }
 0x4ed   :  { %15984 = vmatprep.subr.mxu1 %v17357_v15 }
 0x4ef   :  { %15952 = vmatmul.mubr.f32.vlgmr.msra.gmra.mrb[12].mxu0 %v18126_v27 }
 0x4f0   :  { %15955 = vmatpush3.msra.mxu0 %v18105_v11  ;;  %15956 = vmatprep.mubr.msk.f32.mxu0 %vm17356_vm0, %v17357_v15 }
 0x4f1   :  { %15989 = vmatprep.subr.mxu0 %v17357_v15 }
 0x4f3   :  { %15982 = vmatmul.mubr.f32.vlgmr.msra.gmra.mrb[12].mxu1 %v18135_v50 }
 0x4f4   :  { %15985 = vmatpush3.msra.mxu1 %v18112_v38  ;;  %15986 = vmatprep.mubr.msk.f32.mxu1 %vm17356_vm0, %v17357_v15 }
 0x4f5   :  { %16019 = vmatprep.subr.mxu1 %v17357_v15 }
 0x4f7   :  { %15957 = vmatmul.mubr.f32.vlgmr.msra.gmra.mrb[12].mxu0 %v18126_v27 }
 0x4f8   :  { %v5197_v14 = vpop.f32.mrb[10].mxu0  ;;  %15990 = vmatpush3.msra.mxu0 %v18186_v63  ;;  %15991 = vmatprep.mubr.msk.f32.mxu0 %vm17356_vm0, %v17357_v15 }
 0x4f9   :  { %v6552_v18 = vsel %vm1991_vm2, %v5197_v14, 0  ;;  %v15898_v49 = vpop.f32.mrb[11].mxu0  ;;  %15994 = vmatprep.subr.mxu0 %v17357_v15 }
 0x4fa   :  { %v18213_v25 = vand.u32 4294901760, %v6552_v18  ;;  %v18234_v49 = vand.u32 4294901760, %v7083_v36 }
 0x4fb   :  { %15987 = vmatmul.mubr.f32.vlgmr.msra.gmra.mrb[12].mxu1 %v18135_v50 }
 0x4fc   :  { %v6621_v27 = vsub.f32 %v6552_v18, %v18213_v25  ;;  %v5649_v22 = vpop.f32.mrb[10].mxu1  ;;  %16020 = vmatpush3.msra.mxu1 %v18196_v43  ;;  %16021 = vmatprep.mubr.msk.f32.mxu1 %vm17356_vm0, %v17357_v15 }
 0x4fd   :  { %v7001_v37 = vsel %vm1991_vm2, %v5649_v22, 0  ;;  %v15928_v53 = vpop.f32.mrb[11].mxu1  ;;  %16024 = vmatprep.subr.mxu1 %v17357_v15 }
 0x4fe   :  { %v6622_v50 = vand.u32 4294901760, %v6621_v27  ;;  %v7069_v44 = vand.u32 4294901760, %v7001_v37 }
 0x500   :  { %v6623_v62 = vsub.f32 %v6621_v27, %v6622_v50  ;;  %v7070_v40 = vsub.f32 %v7001_v37, %v7069_v44  ;;  %v14896_v37 = vld [vmem:[%s18849_s0 + $0x8] sm:$0xff] }
 0x502   :  { %v6624_v7 = vand.u32 4294901760, %v6623_v62  ;;  %v7071_v14 = vand.u32 4294901760, %v7070_v40 }
 0x504   :  { %v7072_v18 = vsub.f32 %v7070_v40, %v7071_v14  ;;  %15992 = vmatmul.mubr.f32.vlgmr.msra.gmra.mrb[14].mxu0 %v6624_v7 }
 0x505   :  { %15995 = vmatpush3.msra.mxu0 %v18227_v41  ;;  %15996 = vmatprep.mubr.msk.f32.mxu0 %vm17356_vm0, %v17357_v15 }
 0x506   :  { %v7073_v22 = vand.u32 4294901760, %v7072_v18  ;;  %15999 = vmatprep.subr.mxu0 %v17357_v15 }
 0x508   :  { %16022 = vmatmul.mubr.f32.vlgmr.msra.gmra.mrb[14].mxu1 %v7073_v22 }
 0x509   :  { %16025 = vmatpush3.msra.mxu1 %v18234_v49  ;;  %16026 = vmatprep.mubr.msk.f32.mxu1 %vm17356_vm0, %v17357_v15 }
 0x50a   :  { %16029 = vmatprep.subr.mxu1 %v17357_v15 }
 0x50c   :  { %15997 = vmatmul.mubr.f32.vlgmr.msra.gmra.mrb[14].mxu0 %v18213_v25 }
 0x50d   :  { %16000 = vmatpush3.msra.mxu0 %v18199_v10  ;;  %16001 = vmatprep.mubr.msk.f32.mxu0 %vm17356_vm0, %v17357_v15 }
 0x50e   :  { %16004 = vmatprep.subr.mxu0 %v17357_v15 }
 0x510   :  { %16027 = vmatmul.mubr.f32.vlgmr.msra.gmra.mrb[14].mxu1 %v7069_v44 }
 0x511   :  { %16030 = vmatpush3.msra.mxu1 %v18211_v61  ;;  %16031 = vmatprep.mubr.msk.f32.mxu1 %vm17356_vm0, %v17357_v15 }
 0x512   :  { %16034 = vmatprep.subr.mxu1 %v17357_v15 }
 0x514   :  { %16002 = vmatmul.mubr.f32.vlgmr.msra.gmra.mrb[14].mxu0 %v6621_v27  ;;  %v7467_v27 = vsel %vm44_vm1, %v14896_v37, 0 }
 0x515   :  { %16005 = vmatpush3.msra.mxu0 %v18186_v63  ;;  %16006 = vmatprep.mubr.msk.f32.mxu0 %vm17356_vm0, %v17357_v15  ;;  %v18266_v53 = vand.u32 4294901760, %v7467_v27 }
 0x516   :  { %16009 = vmatprep.subr.mxu0 %v17357_v15 }
 0x517   :  { %v18274_v54 = vsub.f32 %v7467_v27, %v18266_v53 }
 0x518   :  { %16032 = vmatmul.mubr.f32.vlgmr.msra.gmra.mrb[14].mxu1 %v7070_v40 }
 0x519   :  { %16035 = vmatpush3.msra.mxu1 %v18196_v43  ;;  %16036 = vmatprep.mubr.msk.f32.mxu1 %vm17356_vm0, %v17357_v15 }
 0x51a   :  { %16039 = vmatprep.subr.mxu1 %v17357_v15 }
 0x51c   :  { %16007 = vmatmul.mubr.f32.vlgmr.msra.gmra.mrb[14].mxu0 %v6622_v50  ;;  %v18281_v50 = vand.u32 4294901760, %v18274_v54 }
 0x51d   :  { %16010 = vmatpush3.msra.mxu0 %v18208_v35  ;;  %16011 = vmatprep.mubr.msk.f32.mxu0 %vm17356_vm0, %v17357_v15 }
 0x51e   :  { %16014 = vmatprep.subr.mxu0 %v17357_v15  ;;  %v7541_v62 = vsub.f32 %v18274_v54, %v18281_v50 }
 0x520   :  { %16037 = vmatmul.mubr.f32.vlgmr.msra.gmra.mrb[14].mxu1 %v7071_v14  ;;  %v18294_v40 = vand.u32 4294901760, %v7541_v62 }
 0x521   :  { %16040 = vmatpush3.msra.mxu1 %v18225_v52  ;;  %16041 = vmatprep.mubr.msk.f32.mxu1 %vm17356_vm0, %v17357_v15 }
 0x522   :  { %16044 = vmatprep.subr.mxu1 %v17357_v15 }
 0x524   :  { %16012 = vmatmul.mubr.f32.vlgmr.msra.gmra.mrb[14].mxu0 %v18213_v25 }
 0x525   :  { %16015 = vmatpush3.msra.mxu0 %v18186_v63  ;;  %16016 = vmatprep.mubr.msk.f32.mxu0 %vm17356_vm0, %v17357_v15 }
 0x526   :  { %16817 = vmatprep.subr.bf16.mxu0 %v17355_v3 }
 0x528   :  { %16042 = vmatmul.mubr.f32.vlgmr.msra.gmra.mrb[14].mxu1 %v7069_v44 }
 0x529   :  { %16045 = vmatpush3.msra.mxu1 %v18196_v43  ;;  %16046 = vmatprep.mubr.msk.f32.mxu1 %vm17356_vm0, %v17357_v15 }
 0x52a   :  { %16853 = vmatprep.subr.bf16.mxu1 %v17355_v3 }
 0x52c   :  { %16017 = vmatmul.mubr.f32.vlgmr.msra.gmra.mrb[14].mxu0 %v18213_v25 }
 0x52d   :  { %16819 = vmatpush3.bf16.msra.mxu0 %v17426_v17  ;;  %16057 = vmatprep.mubr.msk.f32.mxu0 %vm17356_vm0, %v17357_v15 }
 0x52e   :  { %16820 = vmatprep.subr.bf16.mxu0 %v17355_v3 }
 0x530   :  { %16047 = vmatmul.mubr.f32.vlgmr.msra.gmra.mrb[14].mxu1 %v7069_v44 }
 0x531   :  { %16822 = vmatpush3.bf16.msra.mxu0 %v17430_v21  ;;  %16855 = vmatpush3.bf16.msra.mxu1 %v17428_v20 }
 0x532   :  { %16823 = vmatprep.subr.bf16.mxu0 %v17355_v3  ;;  %16856 = vmatprep.subr.bf16.mxu1 %v17355_v3 }
 0x533   :  { %16123 = vmatprep.mubr.msk.f32.mxu1 %vm17356_vm0, %v17357_v15 }
 0x534   :  { %16058 = vmatmul.mubr.f32.vlgmr.msra.gmra.mrb[16].mxu0 %v18294_v40 }
 0x535   :  { %16825 = vmatpush3.bf16.msra.mxu0 %v17499_v57  ;;  %16858 = vmatpush3.bf16.msra.mxu1 %v17436_v24 }
 0x536   :  { %16826 = vmatprep.subr.bf16.mxu0 %v17355_v3  ;;  %16859 = vmatprep.subr.bf16.mxu1 %v17355_v3 }
 0x537   :  { %16068 = vmatprep.mubr.msk.f32.mxu0 %vm17356_vm0, %v17357_v15 }
 0x538   :  { %16124 = vmatmul.mubr.f32.vlgmr.msra.gmra.mrb[16].mxu1 %v18294_v40 }
 0x539   :  { %16828 = vmatpush3.bf16.msra.mxu0 %v17508_v60  ;;  %16861 = vmatpush3.bf16.msra.mxu1 %v17501_v58 }
 0x53a   :  { %16829 = vmatprep.subr.bf16.mxu0 %v17355_v3  ;;  %16862 = vmatprep.subr.bf16.mxu1 %v17355_v3 }
 0x53b   :  { %16134 = vmatprep.mubr.msk.f32.mxu1 %vm17356_vm0, %v17357_v15 }
 0x53c   :  { %16069 = vmatmul.mubr.f32.vlgmr.msra.gmra.mrb[16].mxu0 %v18266_v53 }
 0x53d   :  { %16831 = vmatpush3.bf16.msra.mxu0 %v17524_v1  ;;  %16864 = vmatpush3.bf16.msra.mxu1 %v17520_v0 }
 0x53e   :  { %16832 = vmatprep.subr.bf16.mxu0 %v17355_v3  ;;  %16865 = vmatprep.subr.bf16.mxu1 %v17355_v3 }
 0x53f   :  { %16079 = vmatprep.mubr.msk.f32.mxu0 %vm17356_vm0, %v17357_v15 }
 0x540   :  { %16135 = vmatmul.mubr.f32.vlgmr.msra.gmra.mrb[16].mxu1 %v18266_v53 }
 0x541   :  { %16834 = vmatpush3.bf16.msra.mxu0 %v17537_v4  ;;  %16867 = vmatpush3.bf16.msra.mxu1 %v17530_v2 }
 0x542   :  { %16835 = vmatprep.subr.bf16.mxu0 %v17355_v3  ;;  %16868 = vmatprep.subr.bf16.mxu1 %v17355_v3 }
 0x543   :  { %16145 = vmatprep.mubr.msk.f32.mxu1 %vm17356_vm0, %v17357_v15 }
 0x544   :  { %16080 = vmatmul.mubr.f32.vlgmr.msra.gmra.mrb[16].mxu0 %v18274_v54 }
 0x545   :  { %16837 = vmatpush3.bf16.msra.mxu0 %v17426_v17  ;;  %16870 = vmatpush3.bf16.msra.mxu1 %v17546_v5  ;;  %v14895_v5 = vld [vmem:[%s18852_s3] ss:$0 sm:$0xff] }
 0x546   :  { %16838 = vmatprep.subr.bf16.mxu0 %v17355_v3  ;;  %16871 = vmatprep.subr.bf16.mxu1 %v17355_v3 }
 0x547   :  { %16090 = vmatprep.mubr.msk.f32.mxu0 %vm17356_vm0, %v17357_v15 }
 0x548   :  { %16146 = vmatmul.mubr.f32.vlgmr.msra.gmra.mrb[16].mxu1 %v18274_v54 }
 0x549   :  { %16840 = vmatpush3.bf16.msra.mxu0 %v17430_v21  ;;  %16873 = vmatpush3.bf16.msra.mxu1 %v17428_v20 }
 0x54a   :  { %16841 = vmatprep.subr.bf16.mxu0 %v17355_v3  ;;  %16874 = vmatprep.subr.bf16.mxu1 %v17355_v3 }
 0x54b   :  { %16156 = vmatprep.mubr.msk.f32.mxu1 %vm17356_vm0, %v17357_v15 }
 0x54c   :  { %16091 = vmatmul.mubr.f32.vlgmr.msra.gmra.mrb[16].mxu0 %v18281_v50 }
 0x54d   :  { %16843 = vmatpush3.bf16.msra.mxu0 %v17570_v6  ;;  %16876 = vmatpush3.bf16.msra.mxu1 %v17436_v24 }
 0x54e   :  { %16844 = vmatprep.subr.bf16.mxu0 %v17355_v3  ;;  %16877 = vmatprep.subr.bf16.mxu1 %v17355_v3 }
 0x54f   :  { %16101 = vmatprep.mubr.msk.f32.mxu0 %vm17356_vm0, %v17357_v15 }
 0x550   :  { %16157 = vmatmul.mubr.f32.vlgmr.msra.gmra.mrb[16].mxu1 %v18281_v50 }
 0x551   :  { %16846 = vmatpush3.bf16.msra.mxu0 %v17599_v12  ;;  %16879 = vmatpush3.bf16.msra.mxu1 %v17584_v9 }
 0x552   :  { %16847 = vmatprep.subr.bf16.mxu0 %v17355_v3  ;;  %16880 = vmatprep.subr.bf16.mxu1 %v17355_v3 }
 0x553   :  { %16167 = vmatprep.mubr.msk.f32.mxu1 %vm17356_vm0, %v17357_v15 }
 0x554   :  { %16102 = vmatmul.mubr.f32.vlgmr.msra.gmra.mrb[16].mxu0 %v18266_v53 }
 0x555   :  { %16849 = vmatpush3.bf16.msra.mxu0 %v17426_v17  ;;  %16882 = vmatpush3.bf16.msra.mxu1 %v17616_v19 }
 0x556   :  { %16850 = vmatprep.subr.bf16.mxu0 %v17355_v3  ;;  %16883 = vmatprep.subr.bf16.mxu1 %v17355_v3 }
 0x557   :  { %16112 = vmatprep.mubr.msk.f32.mxu0 %vm17356_vm0, %v17357_v15 }
 0x558   :  { %16168 = vmatmul.mubr.f32.vlgmr.msra.gmra.mrb[16].mxu1 %v18266_v53 }
 0x559   :  { %16852 = vmatpush3.bf16.msra.mxu0 %v17430_v21  ;;  %16885 = vmatpush3.bf16.msra.mxu1 %v17428_v20 }
 0x55a   :  { %16886 = vmatprep.subr.bf16.mxu1 %v17355_v3  ;;  %16889 = vmatprep.subr.bf16.mxu0 %v17355_v3 }
 0x55b   :  { %16178 = vmatprep.mubr.msk.f32.mxu1 %vm17356_vm0, %v17357_v15 }
 0x55c   :  { %16113 = vmatmul.mubr.f32.vlgmr.msra.gmra.mrb[16].mxu0 %v18266_v53 }
 0x55d   :  { %16888 = vmatpush3.bf16.msra.mxu1 %v17436_v24  ;;  %16891 = vmatpush3.bf16.msra.mxu0 %v17661_v46 }
 0x55e   :  { %16892 = vmatprep.subr.bf16.mxu0 %v17355_v3  ;;  %16925 = vmatprep.subr.bf16.mxu1 %v17355_v3 }
 0x55f   :  { %16189 = vmatprep.mubr.msk.f32.mxu0 %vm17356_vm0, %v17357_v15 }
 0x560   :  { %16179 = vmatmul.mubr.f32.vlgmr.msra.gmra.mrb[16].mxu1 %v18266_v53 }
 0x561   :  { %16894 = vmatpush3.bf16.msra.mxu0 %v17686_v59  ;;  %16927 = vmatpush3.bf16.msra.mxu1 %v17673_v51 }
 0x562   :  { %16895 = vmatprep.subr.bf16.mxu0 %v17355_v3  ;;  %16928 = vmatprep.subr.bf16.mxu1 %v17355_v3 }
 0x563   :  { %16255 = vmatprep.mubr.msk.f32.mxu1 %vm17356_vm0, %v17357_v15 }
 0x564   :  { %16190 = vmatmul.mubr.f32.vlgmr.msra.gmra.mrb[18].mxu0 %v18294_v40 }
 0x565   :  { %16897 = vmatpush3.bf16.msra.mxu0 %v17712_v16  ;;  %16930 = vmatpush3.bf16.msra.mxu1 %v17699_v8 }
 0x566   :  { %16898 = vmatprep.subr.bf16.mxu0 %v17355_v3  ;;  %16931 = vmatprep.subr.bf16.mxu1 %v17355_v3 }
 0x567   :  { %16200 = vmatprep.mubr.msk.f32.mxu0 %vm17356_vm0, %v17357_v15 }
 0x568   :  { %16256 = vmatmul.mubr.f32.vlgmr.msra.gmra.mrb[18].mxu1 %v18294_v40 }
 0x569   :  { %16900 = vmatpush3.bf16.msra.mxu0 %v17721_v28  ;;  %16933 = vmatpush3.bf16.msra.mxu1 %v17716_v23 }
 0x56a   :  { %16901 = vmatprep.subr.bf16.mxu0 %v17355_v3  ;;  %16934 = vmatprep.subr.bf16.mxu1 %v17355_v3 }
 0x56b   :  { %16266 = vmatprep.mubr.msk.f32.mxu1 %vm17356_vm0, %v17357_v15 }
 0x56c   :  { %16201 = vmatmul.mubr.f32.vlgmr.msra.gmra.mrb[18].mxu0 %v18266_v53 }
 0x56d   :  { %16903 = vmatpush3.bf16.msra.mxu0 %v17736_v33  ;;  %16936 = vmatpush3.bf16.msra.mxu1 %v17728_v29 }
 0x56e   :  { %16904 = vmatprep.subr.bf16.mxu0 %v17355_v3  ;;  %16937 = vmatprep.subr.bf16.mxu1 %v17355_v3 }
 0x56f   :  { %16211 = vmatprep.mubr.msk.f32.mxu0 %vm17356_vm0, %v17357_v15 }
 0x570   :  { %16267 = vmatmul.mubr.f32.vlgmr.msra.gmra.mrb[18].mxu1 %v18266_v53 }
 0x571   :  { %16906 = vmatpush3.bf16.msra.mxu0 %v17749_v34  ;;  %16939 = vmatpush3.bf16.msra.mxu1 %v17742_v56 }
 0x572   :  { %16907 = vmatprep.subr.bf16.mxu0 %v17355_v3  ;;  %16940 = vmatprep.subr.bf16.mxu1 %v17355_v3 }
 0x573   :  { %16277 = vmatprep.mubr.msk.f32.mxu1 %vm17356_vm0, %v17357_v15 }
 0x574   :  { %16212 = vmatmul.mubr.f32.vlgmr.msra.gmra.mrb[18].mxu0 %v18274_v54 }
 0x575   :  { %16909 = vmatpush3.bf16.msra.mxu0 %v17661_v46  ;;  %16942 = vmatpush3.bf16.msra.mxu1 %v17758_v47 }
 0x576   :  { %16910 = vmatprep.subr.bf16.mxu0 %v17355_v3  ;;  %16943 = vmatprep.subr.bf16.mxu1 %v17355_v3 }
 0x577   :  { %16222 = vmatprep.mubr.msk.f32.mxu0 %vm17356_vm0, %v17357_v15 }
 0x578   :  { %16278 = vmatmul.mubr.f32.vlgmr.msra.gmra.mrb[18].mxu1 %v18274_v54 }
 0x579   :  { %16912 = vmatpush3.bf16.msra.mxu0 %v17686_v59  ;;  %16945 = vmatpush3.bf16.msra.mxu1 %v17673_v51 }
 0x57a   :  { %16913 = vmatprep.subr.bf16.mxu0 %v17355_v3  ;;  %16946 = vmatprep.subr.bf16.mxu1 %v17355_v3 }
 0x57b   :  { %16288 = vmatprep.mubr.msk.f32.mxu1 %vm17356_vm0, %v17357_v15 }
 0x57c   :  { %16223 = vmatmul.mubr.f32.vlgmr.msra.gmra.mrb[18].mxu0 %v18281_v50 }
 0x57d   :  { %16915 = vmatpush3.bf16.msra.mxu0 %v17782_v48  ;;  %16948 = vmatpush3.bf16.msra.mxu1 %v17699_v8 }
 0x57e   :  { %16916 = vmatprep.subr.bf16.mxu0 %v17355_v3  ;;  %16949 = vmatprep.subr.bf16.mxu1 %v17355_v3 }
 0x57f   :  { %16233 = vmatprep.mubr.msk.f32.mxu0 %vm17356_vm0, %v17357_v15 }
 0x580   :  { %16289 = vmatmul.mubr.f32.vlgmr.msra.gmra.mrb[18].mxu1 %v18281_v50 }
 0x581   :  { %16918 = vmatpush3.bf16.msra.mxu0 %v17799_v30  ;;  %16951 = vmatpush3.bf16.msra.mxu1 %v17790_v32 }
 0x582   :  { %16919 = vmatprep.subr.bf16.mxu0 %v17355_v3  ;;  %16952 = vmatprep.subr.bf16.mxu1 %v17355_v3 }
 0x583   :  { %16299 = vmatprep.mubr.msk.f32.mxu1 %vm17356_vm0, %v17357_v15 }
 0x584   :  { %16234 = vmatmul.mubr.f32.vlgmr.msra.gmra.mrb[18].mxu0 %v18266_v53 }
 0x585   :  { %16921 = vmatpush3.bf16.msra.mxu0 %v17661_v46  ;;  %16954 = vmatpush3.bf16.msra.mxu1 %v17810_v31 }
 0x586   :  { %16922 = vmatprep.subr.bf16.mxu0 %v17355_v3  ;;  %16955 = vmatprep.subr.bf16.mxu1 %v17355_v3 }
 0x587   :  { %16244 = vmatprep.mubr.msk.f32.mxu0 %vm17356_vm0, %v17357_v15 }
 0x588   :  { %16300 = vmatmul.mubr.f32.vlgmr.msra.gmra.mrb[18].mxu1 %v18266_v53 }
 0x589   :  { %16924 = vmatpush3.bf16.msra.mxu0 %v17686_v59  ;;  %16957 = vmatpush3.bf16.msra.mxu1 %v17673_v51 }
 0x58a   :  { %16958 = vmatprep.subr.bf16.mxu1 %v17355_v3  ;;  %16310 = vmatprep.mubr.msk.f32.mxu1 %vm17356_vm0, %v17357_v15 }
 0x58b   :  { %16313 = vmatprep.subr.mxu0 %v17357_v15 }
 0x58c   :  { %16245 = vmatmul.mubr.f32.vlgmr.msra.gmra.mrb[18].mxu0 %v18266_v53 }
 0x58d   :  { %16960 = vmatpush3.bf16.msra.mxu1 %v17699_v8  ;;  %16315 = vmatprep.mubr.msk.f32.mxu0 %vm17356_vm0, %v17357_v15 }
 0x58e   :  { %16343 = vmatprep.subr.mxu1 %v17357_v15 }
 0x590   :  { %16311 = vmatmul.mubr.f32.vlgmr.msra.gmra.mrb[18].mxu1 %v18266_v53 }
 0x591   :  { %16345 = vmatprep.mubr.msk.f32.mxu1 %vm17356_vm0, %v17357_v15 }
 0x5ca   :  { %v6098_v3 = vpop.f32.mrb[12].mxu0 }
 0x5cb   :  { %v15958_v17 = vpop.f32.mrb[13].mxu0  ;;  %v7449_v21 = vsel %vm44_vm1, %v6098_v3, 0.0 }
 0x5ce   :  { %v6547_v20 = vpop.f32.mrb[12].mxu1 }
 0x5cf   :  { %v7450_v24 = vsel %vm44_vm1, %v6547_v20, 0.0  ;;  %v15988_v57 = vpop.f32.mrb[13].mxu1 }
 0x5d0   :  { %v7451_v58 = vadd.f32 %v7450_v24, %v7449_v21 }
 0x5ff   :  { %v6996_v60 = vpop.f32.mrb[14].mxu0 }
 0x600   :  { %v7452_v0 = vsel %vm44_vm1, %v6996_v60, 0.0  ;;  %v16018_v1 = vpop.f32.mrb[15].mxu0 }
 0x601   :  { %v7453_v2 = vadd.f32 %v7452_v0, %v7451_v58 }
 0x603   :  { %v7445_v4 = vpop.f32.mrb[14].mxu1 }
 0x604   :  { %v7454_v6 = vsel %vm44_vm1, %v7445_v4, 0.0  ;;  %v16048_v9 = vpop.f32.mrb[15].mxu1 }
 0x605   :  { %v7455_v12 = vadd.f32 %v7454_v6, %v7453_v2 }
 0x607   :  { %v7462_v19 = vadd.f32 %v14895_v5, %v7455_v12 }
 0x609   :  { %7463 = vst.msk [vmem:[#allocation2] sm:$0xff] %vm44_vm1, %v7462_v19 }
 0x62f   :  { %v18472_v46 = vpop.f32.mrb[16].mxu0 }
 0x630   :  { %9410 = vrot.lane.b32.xlu1 %v18472_v46, %s17358_s1  ;;  %v16114_v51 = vpop.f32.mrb[17].mxu0  ;;  %v9412_v33 = vsel %vm1991_vm2, %v18472_v46, 0 }
 0x631   :  { %v18490_v56 = vand.u32 4294901760, %v9412_v33 }
 0x633   :  { %v18476_v59 = vpop.f32.mrb[16].mxu1  ;;  %v9483_v47 = vsub.f32 %v9412_v33, %v18490_v56 }
 0x634   :  { %v16180_v8 = vpop.f32.mrb[17].mxu1  ;;  %9863 = vrot.lane.b32.xlu1 %v18476_v59, %s17358_s1  ;;  %v9865_v34 = vsel %vm1991_vm2, %v18476_v59, 0 }
 0x635   :  { %v18495_v48 = vand.u32 4294901760, %v9865_v34  ;;  %v9484_v32 = vand.u32 4294901760, %v9483_v47 }
 0x637   :  { %v9936_v30 = vsub.f32 %v9865_v34, %v18495_v48  ;;  %v9485_v36 = vsub.f32 %v9483_v47, %v9484_v32 }
 0x639   :  { %v9937_v25 = vand.u32 4294901760, %v9936_v30  ;;  %v9486_v37 = vand.u32 4294901760, %v9485_v36  ;;  %v17329_v36 = vld [vmem:[%s18853_s4] sm:$0xff]  ;;  %s17360_s4 = smov [#allocation2]  }
 0x63a   :  { %s14884_s17 = sshll.u32 %s17360_s4, 4  ;;  %s14885_s17 = int_to_ptr.vmem [resolvable:$true] %s14884_s17 }
 0x63b   :  { %v9938_v27 = vsub.f32 %v9936_v30, %v9937_v25  ;;  %s17331_s20 = scalar_lea.vmem %s14885_s17, 256  ;;  %p17336_p1 = scmp.lt.s32.totalorder %s14885_s17, %s14885_s17 }
 0x63c   :  { %p17332_p0 = scmp.ne.s32.totalorder %s14885_s17, %s17331_s20  ;;  %p17337_p2 = scmp.lt.s32.totalorder %s17331_s20, %s17331_s20 }
 0x63d   :  { %v9939_v40 = vand.u32 4294901760, %v9938_v27 }
 0x63e   :  { %p17338_p3 = por %p17337_p2, %p17336_p1 }
 0x640   :  { %p17339_p4 = pnand %p17338_p3, %p17332_p0 }
 0x65f   :  { %v18480_v16 = vpop.f32.mrb[18].mxu0 }
 0x660   :  { %10316 = vrot.lane.b32.xlu0 %v18480_v16, %s17358_s1  ;;  %v16246_v23 = vpop.f32.mrb[19].mxu0  ;;  %v10318_v24 = vsel %vm1991_vm2, %v18480_v16, 0 }
 0x661   :  { %v18529_v57 = vand.u32 4294901760, %v10318_v24 }
 0x663   :  { %v18484_v28 = vpop.f32.mrb[18].mxu1  ;;  %v10389_v60 = vsub.f32 %v10318_v24, %v18529_v57 }
 0x664   :  { %v16312_v29 = vpop.f32.mrb[19].mxu1  ;;  %10769 = vrot.lane.b32.xlu1 %v18484_v28, %s17358_s1  ;;  %v10771_v58 = vsel %vm1991_vm2, %v18484_v28, 0 }
 0x665   :  { %v18538_v0 = vand.u32 4294901760, %v10771_v58  ;;  %v10390_v1 = vand.u32 4294901760, %v10389_v60 }
 0x667   :  { %v10842_v2 = vsub.f32 %v10771_v58, %v18538_v0  ;;  %v10391_v9 = vsub.f32 %v10389_v60, %v10390_v1 }
 0x669   :  { %v10843_v5 = vand.u32 4294901760, %v10842_v2  ;;  %v10392_v23 = vand.u32 4294901760, %v10391_v9 }
 0x66b   :  { %v10844_v29 = vsub.f32 %v10842_v2, %v10843_v5 }
 0x6a2   :  { %v9411_v31 = vpop.permute.xlu1 %9410 }
 0x6a3   :  { %v9414_v44 = vsel %vm1991_vm2, %v9411_v31, 0 }
 0x6a4   :  { %v9417_v7 = vand.u32 4294901760, %v9414_v44 }
 0x6a6   :  { %v9494_v14 = vsub.f32 %v9414_v44, %v9417_v7  ;;  %16314 = vmatpush3.xpose.msra.mxu0 %v9417_v7  ;;  %v9864_v18 = vpop.permute.xlu1 %9863 }
 0x6a7   :  { %v9867_v22 = vsel %vm1991_vm2, %v9864_v18, 0  ;;  %16318 = vmatprep.subr.mxu0 %v17357_v15 }
 0x6a8   :  { %v9495_v53 = vand.u32 4294901760, %v9494_v14  ;;  %v9870_v54 = vand.u32 4294901760, %v9867_v22 }
 0x6a9   :  { %16316 = vmatmul.mubr.f32.vlgmr.msra.gmra.mrb[20].mxu0 %v9486_v37 }
 0x6aa   :  { %v9496_v50 = vsub.f32 %v9494_v14, %v9495_v53  ;;  %v9947_v62 = vsub.f32 %v9867_v22, %v9870_v54  ;;  %16344 = vmatpush3.xpose.msra.mxu1 %v9870_v54  ;;  %16320 = vmatprep.mubr.msk.f32.mxu0 %vm17356_vm0, %v17357_v15 }
 0x6ab   :  { %16348 = vmatprep.subr.mxu1 %v17357_v15 }
 0x6ac   :  { %v9497_v3 = vand.u32 4294901760, %v9496_v50  ;;  %v9948_v17 = vand.u32 4294901760, %v9947_v62 }
 0x6ad   :  { %16346 = vmatmul.mubr.f32.vlgmr.msra.gmra.mrb[20].mxu1 %v9939_v40 }
 0x6ae   :  { %v9949_v20 = vsub.f32 %v9947_v62, %v9948_v17  ;;  %16319 = vmatpush3.xpose.msra.mxu0 %v9497_v3  ;;  %16350 = vmatprep.mubr.msk.f32.mxu1 %vm17356_vm0, %v17357_v15 }
 0x6af   :  { %16323 = vmatprep.subr.mxu0 %v17357_v15 }
 0x6b0   :  { %v9950_v21 = vand.u32 4294901760, %v9949_v20 }
 0x6b1   :  { %16321 = vmatmul.mubr.f32.vlgmr.msra.gmra.mrb[20].mxu0 %v18490_v56 }
 0x6b2   :  { %16324 = vmatpush3.xpose.msra.mxu0 %v9494_v14  ;;  %16349 = vmatpush3.xpose.msra.mxu1 %v9950_v21 }
 0x6b3   :  { %16353 = vmatprep.subr.mxu1 %v17357_v15  ;;  %16325 = vmatprep.mubr.msk.f32.mxu0 %vm17356_vm0, %v17357_v15 }
 0x6b4   :  { %16328 = vmatprep.subr.mxu0 %v17357_v15 }
 0x6b5   :  { %16351 = vmatmul.mubr.f32.vlgmr.msra.gmra.mrb[20].mxu1 %v18495_v48 }
 0x6b6   :  { %16354 = vmatpush3.xpose.msra.mxu1 %v9947_v62  ;;  %16355 = vmatprep.mubr.msk.f32.mxu1 %vm17356_vm0, %v17357_v15 }
 0x6b7   :  { %16358 = vmatprep.subr.mxu1 %v17357_v15 }
 0x6b9   :  { %16326 = vmatmul.mubr.f32.vlgmr.msra.gmra.mrb[20].mxu0 %v9483_v47 }
 0x6ba   :  { %16329 = vmatpush3.xpose.msra.mxu0 %v9417_v7  ;;  %16330 = vmatprep.mubr.msk.f32.mxu0 %vm17356_vm0, %v17357_v15 }
 0x6bb   :  { %16333 = vmatprep.subr.mxu0 %v17357_v15 }
 0x6bd   :  { %16356 = vmatmul.mubr.f32.vlgmr.msra.gmra.mrb[20].mxu1 %v9936_v30 }
 0x6be   :  { %16359 = vmatpush3.xpose.msra.mxu1 %v9870_v54  ;;  %16360 = vmatprep.mubr.msk.f32.mxu1 %vm17356_vm0, %v17357_v15 }
 0x6bf   :  { %16363 = vmatprep.subr.mxu1 %v17357_v15 }
 0x6c1   :  { %16331 = vmatmul.mubr.f32.vlgmr.msra.gmra.mrb[20].mxu0 %v9484_v32 }
 0x6c2   :  { %16334 = vmatpush3.xpose.msra.mxu0 %v9495_v53  ;;  %16335 = vmatprep.mubr.msk.f32.mxu0 %vm17356_vm0, %v17357_v15 }
 0x6c3   :  { %16338 = vmatprep.subr.mxu0 %v17357_v15 }
 0x6c5   :  { %16361 = vmatmul.mubr.f32.vlgmr.msra.gmra.mrb[20].mxu1 %v9937_v25 }
 0x6c6   :  { %16364 = vmatpush3.xpose.msra.mxu1 %v9948_v17  ;;  %16365 = vmatprep.mubr.msk.f32.mxu1 %vm17356_vm0, %v17357_v15 }
 0x6c7   :  { %16368 = vmatprep.subr.mxu1 %v17357_v15 }
 0x6c9   :  { %16336 = vmatmul.mubr.f32.vlgmr.msra.gmra.mrb[20].mxu0 %v18490_v56 }
 0x6ca   :  { %16339 = vmatpush3.xpose.msra.mxu0 %v9417_v7  ;;  %16340 = vmatprep.mubr.msk.f32.mxu0 %vm17356_vm0, %v17357_v15 }
 0x6cb   :  { %16373 = vmatprep.subr.mxu0 %v17357_v15 }
 0x6cd   :  { %16366 = vmatmul.mubr.f32.vlgmr.msra.gmra.mrb[20].mxu1 %v18495_v48 }
 0x6ce   :  { %16369 = vmatpush3.xpose.msra.mxu1 %v9870_v54  ;;  %16370 = vmatprep.mubr.msk.f32.mxu1 %vm17356_vm0, %v17357_v15 }
 0x6cf   :  { %16403 = vmatprep.subr.mxu1 %v17357_v15 }
 0x6d1   :  { %16341 = vmatmul.mubr.f32.vlgmr.msra.gmra.mrb[20].mxu0 %v18490_v56 }
 0x6d2   :  { %v10317_v4 = vpop.permute.xlu0 %10316  ;;  %16375 = vmatprep.mubr.msk.f32.mxu0 %vm17356_vm0, %v17357_v15 }
 0x6d3   :  { %v10320_v6 = vsel %vm1991_vm2, %v10317_v4, 0 }
 0x6d4   :  { %v10323_v12 = vand.u32 4294901760, %v10320_v6 }
 0x6d5   :  { %16371 = vmatmul.mubr.f32.vlgmr.msra.gmra.mrb[20].mxu1 %v18495_v48  ;;  %v10845_v48 = vand.u32 4294901760, %v10844_v29 }
 0x6d6   :  { %v10400_v19 = vsub.f32 %v10320_v6, %v10323_v12  ;;  %v10770_v51 = vpop.permute.xlu1 %10769  ;;  %16374 = vmatpush3.xpose.msra.mxu0 %v10323_v12  ;;  %16405 = vmatprep.mubr.msk.f32.mxu1 %vm17356_vm0, %v17357_v15 }
 0x6d7   :  { %v10773_v8 = vsel %vm1991_vm2, %v10770_v51, 0  ;;  %16378 = vmatprep.subr.mxu0 %v17357_v15 }
 0x6d8   :  { %v10401_v33 = vand.u32 4294901760, %v10400_v19  ;;  %v10776_v56 = vand.u32 4294901760, %v10773_v8 }
 0x6d9   :  { %16376 = vmatmul.mubr.f32.vlgmr.msra.gmra.mrb[22].mxu0 %v10392_v23 }
 0x6da   :  { %v10402_v34 = vsub.f32 %v10400_v19, %v10401_v33  ;;  %v10853_v47 = vsub.f32 %v10773_v8, %v10776_v56  ;;  %16404 = vmatpush3.xpose.msra.mxu1 %v10776_v56  ;;  %16380 = vmatprep.mubr.msk.f32.mxu0 %vm17356_vm0, %v17357_v15 }
 0x6db   :  { %16408 = vmatprep.subr.mxu1 %v17357_v15 }
 0x6dc   :  { %v10403_v32 = vand.u32 4294901760, %v10402_v34  ;;  %v10854_v30 = vand.u32 4294901760, %v10853_v47 }
 0x6dd   :  { %16406 = vmatmul.mubr.f32.vlgmr.msra.gmra.mrb[22].mxu1 %v10845_v48 }
 0x6de   :  { %v10855_v31 = vsub.f32 %v10853_v47, %v10854_v30  ;;  %16379 = vmatpush3.xpose.msra.mxu0 %v10403_v32  ;;  %16410 = vmatprep.mubr.msk.f32.mxu1 %vm17356_vm0, %v17357_v15 }
 0x6df   :  { %16383 = vmatprep.subr.mxu0 %v17357_v15 }
 0x6e0   :  { %v10856_v25 = vand.u32 4294901760, %v10855_v31 }
 0x6e1   :  { %16381 = vmatmul.mubr.f32.vlgmr.msra.gmra.mrb[22].mxu0 %v18529_v57 }
 0x6e2   :  { %16384 = vmatpush3.xpose.msra.mxu0 %v10400_v19  ;;  %16409 = vmatpush3.xpose.msra.mxu1 %v10856_v25 }
 0x6e3   :  { %16413 = vmatprep.subr.mxu1 %v17357_v15  ;;  %16385 = vmatprep.mubr.msk.f32.mxu0 %vm17356_vm0, %v17357_v15 }
 0x6e4   :  { %16388 = vmatprep.subr.mxu0 %v17357_v15 }
 0x6e5   :  { %16411 = vmatmul.mubr.f32.vlgmr.msra.gmra.mrb[22].mxu1 %v18538_v0 }
 0x6e6   :  { %16414 = vmatpush3.xpose.msra.mxu1 %v10853_v47  ;;  %16415 = vmatprep.mubr.msk.f32.mxu1 %vm17356_vm0, %v17357_v15 }
 0x6e7   :  { %16418 = vmatprep.subr.mxu1 %v17357_v15 }
 0x6e9   :  { %16386 = vmatmul.mubr.f32.vlgmr.msra.gmra.mrb[22].mxu0 %v10389_v60 }
 0x6ea   :  { %16389 = vmatpush3.xpose.msra.mxu0 %v10323_v12  ;;  %16390 = vmatprep.mubr.msk.f32.mxu0 %vm17356_vm0, %v17357_v15 }
 0x6eb   :  { %16393 = vmatprep.subr.mxu0 %v17357_v15 }
 0x6ed   :  { %16416 = vmatmul.mubr.f32.vlgmr.msra.gmra.mrb[22].mxu1 %v10842_v2 }
 0x6ee   :  { %16419 = vmatpush3.xpose.msra.mxu1 %v10776_v56  ;;  %16420 = vmatprep.mubr.msk.f32.mxu1 %vm17356_vm0, %v17357_v15 }
 0x6ef   :  { %16423 = vmatprep.subr.mxu1 %v17357_v15 }
 0x6f1   :  { %16391 = vmatmul.mubr.f32.vlgmr.msra.gmra.mrb[22].mxu0 %v10390_v1 }
 0x6f2   :  { %16394 = vmatpush3.xpose.msra.mxu0 %v10401_v33  ;;  %16395 = vmatprep.mubr.msk.f32.mxu0 %vm17356_vm0, %v17357_v15 }
 0x6f3   :  { %16398 = vmatprep.subr.mxu0 %v17357_v15 }
 0x6f5   :  { %16421 = vmatmul.mubr.f32.vlgmr.msra.gmra.mrb[22].mxu1 %v10843_v5 }
 0x6f6   :  { %16424 = vmatpush3.xpose.msra.mxu1 %v10854_v30  ;;  %16425 = vmatprep.mubr.msk.f32.mxu1 %vm17356_vm0, %v17357_v15 }
 0x6f7   :  { %16428 = vmatprep.subr.mxu1 %v17357_v15 }
 0x6f9   :  { %16396 = vmatmul.mubr.f32.vlgmr.msra.gmra.mrb[22].mxu0 %v18529_v57 }
 0x6fa   :  { %16399 = vmatpush3.xpose.msra.mxu0 %v10323_v12  ;;  %16400 = vmatprep.mubr.msk.f32.mxu0 %vm17356_vm0, %v17357_v15 }
 0x6fb   :  { %16433 = vmatprep.subr.mxu0 %v17357_v15 }
 0x6fd   :  { %16426 = vmatmul.mubr.f32.vlgmr.msra.gmra.mrb[22].mxu1 %v18538_v0 }
 0x6fe   :  { %16429 = vmatpush3.xpose.msra.mxu1 %v10776_v56  ;;  %16430 = vmatprep.mubr.msk.f32.mxu1 %vm17356_vm0, %v17357_v15 }
 0x6ff   :  { %16463 = vmatprep.subr.mxu1 %v17357_v15 }
 0x701   :  { %16401 = vmatmul.mubr.f32.vlgmr.msra.gmra.mrb[22].mxu0 %v18529_v57 }
 0x702   :  { %16435 = vmatprep.mubr.msk.f32.mxu0 %vm17356_vm0, %v17357_v15 }
 0x705   :  { %16431 = vmatmul.mubr.f32.vlgmr.msra.gmra.mrb[22].mxu1 %v18538_v0 }
 0x706   :  { %16465 = vmatprep.mubr.msk.f32.mxu1 %vm17356_vm0, %v17357_v15 }
 0x7a4   :  { %v9858_v44 = vpop.f32.mrb[20].mxu0 }
 0x7a5   :  { %v16965_v7 = vadd.f32 %v17329_v36, %v9858_v44  ;;  %v16342_v14 = vpop.f32.mrb[21].mxu0 }
 0x7a7   :  { %v11221_v18 = vsel %vm1991_vm2, %v16965_v7, -inf }
 0x7a8   :  { %v10311_v22 = vpop.f32.mrb[20].mxu1  ;;  %11222 = vmax.xlane.f32.xlu0 %v11221_v18 }
 0x7a9   :  { %v16966_v37 = vadd.f32 %v17329_v36, %v10311_v22  ;;  %v16372_v27 = vpop.f32.mrb[21].mxu1 }
 0x7ab   :  { %v11224_v53 = vsel %vm1991_vm2, %v16966_v37, -inf }
 0x7ac   :  { %11225 = vmax.xlane.f32.xlu1 %v11224_v53 }
 0x7d4   :  { %v10764_v54 = vpop.f32.mrb[22].mxu0 }
 0x7d5   :  { %v16967_v50 = vadd.f32 %v17329_v36, %v10764_v54  ;;  %v16402_v62 = vpop.f32.mrb[23].mxu0 }
 0x7d7   :  { %v11227_v40 = vsel %vm1991_vm2, %v16967_v50, -inf }
 0x7d8   :  { %v11217_v3 = vpop.f32.mrb[22].mxu1  ;;  %11228 = vmax.xlane.f32.xlu0 %v11227_v40 }
 0x7d9   :  { %v16968_v17 = vadd.f32 %v17329_v36, %v11217_v3  ;;  %v16432_v20 = vpop.f32.mrb[23].mxu1 }
 0x7db   :  { %v11230_v21 = vsel %vm1991_vm2, %v16968_v17, -inf }
 0x7dc   :  { %11231 = vmax.xlane.f32.xlu0 %v11230_v21 }
 0x835   :  { %v11223_v24 = vpop.xlane.xlu0 %11222 }
 0x836   :  { %v11233_v57 = vsub.f32 %v16965_v7, %v11223_v24 }
 0x838   :  { %v11237_v58 = vmul.f32 1.442695, %v11233_v57 }
 0x839   :  { %v11226_v60 = vpop.xlane.xlu1 %11225 }
 0x83a   :  { %17313 = vpow2.f32 %v11237_v58  ;;  %v11234_v0 = vsub.f32 %v16966_v37, %v11226_v60 }
 0x83c   :  { %v11239_v1 = vmul.f32 1.442695, %v11234_v0 }
 0x83e   :  { %17315 = vpow2.f32 %v11239_v1 }
 0x844   :  { %v17314_v2 = vpop.eup %17313 }
 0x845   :  { %v11245_v4 = vsel %vm1991_vm2, %v17314_v2, 0.0 }
 0x846   :  { %11246 = vadd.xlane.f32.xlu1 %v11245_v4 }
 0x848   :  { %v17316_v5 = vpop.eup %17315 }
 0x849   :  { %v11248_v6 = vsel %vm1991_vm2, %v17316_v5, 0.0 }
 0x84a   :  { %11249 = vadd.xlane.f32.xlu0 %v11248_v6 }
 0x857   :  { %11265 = vrot.lane.b32.xlu1 %v18472_v46, %s17359_s29 }
 0x860   :  { %11717 = vrot.lane.b32.xlu0 %v18476_v59, %s17359_s29 }
 0x865   :  { %v11229_v9 = vpop.xlane.xlu0 %11228 }
 0x866   :  { %v11235_v12 = vsub.f32 %v16967_v50, %v11229_v9 }
 0x868   :  { %v11241_v19 = vmul.f32 1.442695, %v11235_v12 }
 0x869   :  { %v11232_v51 = vpop.xlane.xlu0 %11231 }
 0x86a   :  { %v11236_v8 = vsub.f32 %v16968_v17, %v11232_v51  ;;  %17317 = vpow2.f32 %v11241_v19 }
 0x86c   :  { %v11243_v23 = vmul.f32 1.442695, %v11236_v8 }
 0x86e   :  { %17319 = vpow2.f32 %v11243_v23 }
 0x874   :  { %v18609_v29 = vpop.eup %17317 }
 0x875   :  { %v11251_v33 = vsel %vm1991_vm2, %v18609_v29, 0.0 }
 0x878   :  { %v18613_v56 = vpop.eup %17319 }
 0x879   :  { %v11254_v46 = vsel %vm1991_vm2, %v18613_v56, 0.0 }
 0x87b   :  { %11252 = vadd.xlane.f32.xlu1 %v11251_v33 }
 0x87f   :  { %11255 = vadd.xlane.f32.xlu0 %v11254_v46 }
 0x88c   :  { %12169 = vrot.lane.b32.xlu1 %v18480_v16, %s17359_s29 }
 0x895   :  { %12621 = vrot.lane.b32.xlu0 %v18484_v28, %s17359_s29 }
 0x8d3   :  { %v11247_v59 = vpop.xlane.xlu1 %11246 }
 0x8d4   :  { %17321 = vrcp.f32 %v11247_v59 }
 0x8d7   :  { %v11266_v34 = vpop.permute.xlu1 %11265  ;;  %v11250_v47 = vpop.xlane.xlu0 %11249 }
 0x8d8   :  { %v18621_v48 = vand.u32 4294901760, %v11266_v34  ;;  %17323 = vrcp.f32 %v11250_v47 }
 0x8da   :  { %16434 = vmatpush3.msra.mxu0 %v18621_v48  ;;  %v11349_v28 = vsub.f32 %v11266_v34, %v18621_v48 }
 0x8db   :  { %v11718_v32 = vpop.permute.xlu0 %11717  ;;  %16438 = vmatprep.subr.mxu0 %v17357_v15 }
 0x8dc   :  { %v18625_v30 = vand.u32 4294901760, %v11718_v32  ;;  %v11350_v7 = vand.u32 4294901760, %v11349_v28 }
 0x8de   :  { %v17322_v31 = vpop.eup %17321  ;;  %16464 = vmatpush3.msra.mxu1 %v18625_v30  ;;  %v11801_v18 = vsub.f32 %v11718_v32, %v18625_v30  ;;  %v11351_v54 = vsub.f32 %v11349_v28, %v11350_v7 }
 0x8df   :  { %v11258_v16 = vmul.f32 %v17322_v31, %v17314_v2  ;;  %16468 = vmatprep.subr.mxu1 %v17357_v15 }
 0x8e0   :  { %v11802_v50 = vand.u32 4294901760, %v11801_v18  ;;  %v11352_v20 = vand.u32 4294901760, %v11351_v54 }
 0x8e1   :  { %v11269_v25 = vsel %vm1991_vm2, %v11258_v16, 0 }
 0x8e2   :  { %v17324_v44 = vpop.eup %17323  ;;  %v18631_v36 = vand.u32 4294901760, %v11269_v25  ;;  %v11803_v21 = vsub.f32 %v11801_v18, %v11802_v50 }
 0x8e3   :  { %v11260_v14 = vmul.f32 %v17324_v44, %v17316_v5 }
 0x8e4   :  { %v11338_v22 = vsub.f32 %v11269_v25, %v18631_v36  ;;  %v11804_v58 = vand.u32 4294901760, %v11803_v21 }
 0x8e5   :  { %v11721_v37 = vsel %vm1991_vm2, %v11260_v14, 0 }
 0x8e6   :  { %v11339_v27 = vand.u32 4294901760, %v11338_v22  ;;  %v18636_v53 = vand.u32 4294901760, %v11721_v37 }
 0x8e8   :  { %v11340_v62 = vsub.f32 %v11338_v22, %v11339_v27  ;;  %v11790_v40 = vsub.f32 %v11721_v37, %v18636_v53 }
 0x8ea   :  { %v11341_v3 = vand.u32 4294901760, %v11340_v62  ;;  %v11791_v17 = vand.u32 4294901760, %v11790_v40 }
 0x8ec   :  { %16436 = vmatmul.mubr.f32.vlgmr.msra.gmra.mrb[24].mxu0 %v11341_v3  ;;  %v11792_v24 = vsub.f32 %v11790_v40, %v11791_v17 }
 0x8ed   :  { %16439 = vmatpush3.msra.mxu0 %v11352_v20  ;;  %16440 = vmatprep.mubr.msk.f32.mxu0 %vm17356_vm0, %v17357_v15 }
 0x8ee   :  { %v11793_v57 = vand.u32 4294901760, %v11792_v24  ;;  %16443 = vmatprep.subr.mxu0 %v17357_v15 }
 0x8f0   :  { %16466 = vmatmul.mubr.f32.vlgmr.msra.gmra.mrb[24].mxu1 %v11793_v57 }
 0x8f1   :  { %16469 = vmatpush3.msra.mxu1 %v11804_v58  ;;  %16470 = vmatprep.mubr.msk.f32.mxu1 %vm17356_vm0, %v17357_v15 }
 0x8f2   :  { %16473 = vmatprep.subr.mxu1 %v17357_v15 }
 0x8f4   :  { %16441 = vmatmul.mubr.f32.vlgmr.msra.gmra.mrb[24].mxu0 %v18631_v36 }
 0x8f5   :  { %16444 = vmatpush3.msra.mxu0 %v11349_v28  ;;  %16445 = vmatprep.mubr.msk.f32.mxu0 %vm17356_vm0, %v17357_v15 }
 0x8f6   :  { %16448 = vmatprep.subr.mxu0 %v17357_v15 }
 0x8f8   :  { %16471 = vmatmul.mubr.f32.vlgmr.msra.gmra.mrb[24].mxu1 %v18636_v53 }
 0x8f9   :  { %16474 = vmatpush3.msra.mxu1 %v11801_v18  ;;  %16475 = vmatprep.mubr.msk.f32.mxu1 %vm17356_vm0, %v17357_v15 }
 0x8fa   :  { %16478 = vmatprep.subr.mxu1 %v17357_v15 }
 0x8fc   :  { %16446 = vmatmul.mubr.f32.vlgmr.msra.gmra.mrb[24].mxu0 %v11338_v22 }
 0x8fd   :  { %16449 = vmatpush3.msra.mxu0 %v18621_v48  ;;  %16450 = vmatprep.mubr.msk.f32.mxu0 %vm17356_vm0, %v17357_v15 }
 0x8fe   :  { %16453 = vmatprep.subr.mxu0 %v17357_v15 }
 0x900   :  { %16476 = vmatmul.mubr.f32.vlgmr.msra.gmra.mrb[24].mxu1 %v11790_v40 }
 0x901   :  { %16479 = vmatpush3.msra.mxu1 %v18625_v30  ;;  %16480 = vmatprep.mubr.msk.f32.mxu1 %vm17356_vm0, %v17357_v15 }
 0x902   :  { %16483 = vmatprep.subr.mxu1 %v17357_v15 }
 0x904   :  { %16451 = vmatmul.mubr.f32.vlgmr.msra.gmra.mrb[24].mxu0 %v11339_v27 }
 0x905   :  { %16454 = vmatpush3.msra.mxu0 %v11350_v7  ;;  %16455 = vmatprep.mubr.msk.f32.mxu0 %vm17356_vm0, %v17357_v15 }
 0x906   :  { %16458 = vmatprep.subr.mxu0 %v17357_v15 }
 0x908   :  { %v11253_v60 = vpop.xlane.xlu1 %11252  ;;  %16481 = vmatmul.mubr.f32.vlgmr.msra.gmra.mrb[24].mxu1 %v11791_v17 }
 0x909   :  { %17325 = vrcp.f32 %v11253_v60  ;;  %16484 = vmatpush3.msra.mxu1 %v11802_v50  ;;  %16485 = vmatprep.mubr.msk.f32.mxu1 %vm17356_vm0, %v17357_v15 }
 0x90a   :  { %16488 = vmatprep.subr.mxu1 %v17357_v15 }
 0x90c   :  { %16456 = vmatmul.mubr.f32.vlgmr.msra.gmra.mrb[24].mxu0 %v18631_v36  ;;  %v11256_v0 = vpop.xlane.xlu0 %11255  ;;  %v12170_v1 = vpop.permute.xlu1 %12169 }
 0x90d   :  { %16459 = vmatpush3.msra.mxu0 %v18621_v48  ;;  %17327 = vrcp.f32 %v11256_v0  ;;  %16460 = vmatprep.mubr.msk.f32.mxu0 %vm17356_vm0, %v17357_v15  ;;  %v18672_v2 = vand.u32 4294901760, %v12170_v1 }
 0x90e   :  { %16493 = vmatprep.subr.mxu0 %v17357_v15 }
 0x90f   :  { %v12253_v9 = vsub.f32 %v12170_v1, %v18672_v2 }
 0x910   :  { %16486 = vmatmul.mubr.f32.vlgmr.msra.gmra.mrb[24].mxu1 %v18636_v53  ;;  %v12622_v4 = vpop.permute.xlu0 %12621 }
 0x911   :  { %16489 = vmatpush3.msra.mxu1 %v18625_v30  ;;  %16490 = vmatprep.mubr.msk.f32.mxu1 %vm17356_vm0, %v17357_v15  ;;  %v18681_v12 = vand.u32 4294901760, %v12622_v4  ;;  %v12254_v23 = vand.u32 4294901760, %v12253_v9 }
 0x912   :  { %16523 = vmatprep.subr.mxu1 %v17357_v15 }
 0x913   :  { %v17326_v5 = vpop.eup %17325  ;;  %v12705_v33 = vsub.f32 %v12622_v4, %v18681_v12  ;;  %v12255_v48 = vsub.f32 %v12253_v9, %v12254_v23 }
 0x914   :  { %v11262_v6 = vmul.f32 %v17326_v5, %v18609_v29  ;;  %16461 = vmatmul.mubr.f32.vlgmr.msra.gmra.mrb[24].mxu0 %v18631_v36 }
 0x915   :  { %16494 = vmatpush3.msra.mxu0 %v18672_v2  ;;  %16495 = vmatprep.mubr.msk.f32.mxu0 %vm17356_vm0, %v17357_v15  ;;  %v12706_v32 = vand.u32 4294901760, %v12705_v33  ;;  %v12256_v28 = vand.u32 4294901760, %v12255_v48 }
 0x916   :  { %16498 = vmatprep.subr.mxu0 %v17357_v15  ;;  %v12173_v19 = vsel %vm1991_vm2, %v11262_v6, 0 }
 0x917   :  { %v17328_v51 = vpop.eup %17327  ;;  %v12241_v8 = vand.u32 4294901760, %v12173_v19  ;;  %v12707_v25 = vsub.f32 %v12705_v33, %v12706_v32 }
 0x918   :  { %v11264_v29 = vmul.f32 %v17328_v51, %v18613_v56  ;;  %16491 = vmatmul.mubr.f32.vlgmr.msra.gmra.mrb[24].mxu1 %v18636_v53 }
 0x919   :  { %16524 = vmatpush3.msra.mxu1 %v18681_v12  ;;  %v12242_v46 = vsub.f32 %v12173_v19, %v12241_v8  ;;  %16525 = vmatprep.mubr.msk.f32.mxu1 %vm17356_vm0, %v17357_v15  ;;  %v12708_v7 = vand.u32 4294901760, %v12707_v25 }
 0x91a   :  { %16528 = vmatprep.subr.mxu1 %v17357_v15  ;;  %v12625_v59 = vsel %vm1991_vm2, %v11264_v29, 0  ;;  %v17330_v29 = vld [vmem:[%s18852_s3] ss:$0 sm:$0xff] }
 0x91b   :  { %v12243_v34 = vand.u32 4294901760, %v12242_v46  ;;  %v12693_v47 = vand.u32 4294901760, %v12625_v59 }
 0x91d   :  { %v12244_v30 = vsub.f32 %v12242_v46, %v12243_v34  ;;  %v12694_v56 = vsub.f32 %v12625_v59, %v12693_v47 }
 0x91f   :  { %v12245_v31 = vand.u32 4294901760, %v12244_v30  ;;  %v12695_v16 = vand.u32 4294901760, %v12694_v56 }
 0x921   :  { %16496 = vmatmul.mubr.f32.vlgmr.msra.gmra.mrb[26].mxu0 %v12245_v31  ;;  %v12696_v44 = vsub.f32 %v12694_v56, %v12695_v16 }
 0x922   :  { %16499 = vmatpush3.msra.mxu0 %v12256_v28  ;;  %16500 = vmatprep.mubr.msk.f32.mxu0 %vm17356_vm0, %v17357_v15 }
 0x923   :  { %v12697_v36 = vand.u32 4294901760, %v12696_v44  ;;  %16503 = vmatprep.subr.mxu0 %v17357_v15 }
 0x925   :  { %16526 = vmatmul.mubr.f32.vlgmr.msra.gmra.mrb[26].mxu1 %v12697_v36 }
 0x926   :  { %16529 = vmatpush3.msra.mxu1 %v12708_v7  ;;  %16530 = vmatprep.mubr.msk.f32.mxu1 %vm17356_vm0, %v17357_v15 }
 0x927   :  { %16533 = vmatprep.subr.mxu1 %v17357_v15 }
 0x929   :  { %16501 = vmatmul.mubr.f32.vlgmr.msra.gmra.mrb[26].mxu0 %v12241_v8 }
 0x92a   :  { %16504 = vmatpush3.msra.mxu0 %v12253_v9  ;;  %16505 = vmatprep.mubr.msk.f32.mxu0 %vm17356_vm0, %v17357_v15 }
 0x92b   :  { %16508 = vmatprep.subr.mxu0 %v17357_v15 }
 0x92d   :  { %16531 = vmatmul.mubr.f32.vlgmr.msra.gmra.mrb[26].mxu1 %v12693_v47 }
 0x92e   :  { %16534 = vmatpush3.msra.mxu1 %v12705_v33  ;;  %16535 = vmatprep.mubr.msk.f32.mxu1 %vm17356_vm0, %v17357_v15 }
 0x92f   :  { %16538 = vmatprep.subr.mxu1 %v17357_v15 }
 0x931   :  { %16506 = vmatmul.mubr.f32.vlgmr.msra.gmra.mrb[26].mxu0 %v12242_v46 }
 0x932   :  { %16509 = vmatpush3.msra.mxu0 %v18672_v2  ;;  %16510 = vmatprep.mubr.msk.f32.mxu0 %vm17356_vm0, %v17357_v15 }
 0x933   :  { %16513 = vmatprep.subr.mxu0 %v17357_v15 }
 0x935   :  { %16536 = vmatmul.mubr.f32.vlgmr.msra.gmra.mrb[26].mxu1 %v12694_v56 }
 0x936   :  { %16539 = vmatpush3.msra.mxu1 %v18681_v12  ;;  %16540 = vmatprep.mubr.msk.f32.mxu1 %vm17356_vm0, %v17357_v15 }
 0x937   :  { %16543 = vmatprep.subr.mxu1 %v17357_v15 }
 0x939   :  { %16511 = vmatmul.mubr.f32.vlgmr.msra.gmra.mrb[26].mxu0 %v12243_v34 }
 0x93a   :  { %16514 = vmatpush3.msra.mxu0 %v12254_v23  ;;  %16515 = vmatprep.mubr.msk.f32.mxu0 %vm17356_vm0, %v17357_v15 }
 0x93b   :  { %16518 = vmatprep.subr.mxu0 %v17357_v15 }
 0x93d   :  { %16541 = vmatmul.mubr.f32.vlgmr.msra.gmra.mrb[26].mxu1 %v12695_v16 }
 0x93e   :  { %16544 = vmatpush3.msra.mxu1 %v12706_v32  ;;  %16545 = vmatprep.mubr.msk.f32.mxu1 %vm17356_vm0, %v17357_v15 }
 0x93f   :  { %16548 = vmatprep.subr.mxu1 %v17357_v15 }
 0x941   :  { %16516 = vmatmul.mubr.f32.vlgmr.msra.gmra.mrb[26].mxu0 %v12241_v8 }
 0x942   :  { %16519 = vmatpush3.msra.mxu0 %v18672_v2  ;;  %16520 = vmatprep.mubr.msk.f32.mxu0 %vm17356_vm0, %v17357_v15 }
 0x943   :  { %16553 = vmatprep.subr.mxu0 %v17357_v15 }
 0x945   :  { %16546 = vmatmul.mubr.f32.vlgmr.msra.gmra.mrb[26].mxu1 %v12693_v47 }
 0x946   :  { %16549 = vmatpush3.msra.mxu1 %v18681_v12  ;;  %16550 = vmatprep.mubr.msk.f32.mxu1 %vm17356_vm0, %v17357_v15 }
 0x947   :  { %16583 = vmatprep.subr.mxu1 %v17357_v15 }
 0x949   :  { %16521 = vmatmul.mubr.f32.vlgmr.msra.gmra.mrb[26].mxu0 %v12241_v8 }
 0x94a   :  { %16554 = vmatpush3.msra.mxu0 %v18105_v11  ;;  %16555 = vmatprep.mubr.msk.f32.mxu0 %vm17356_vm0, %v17357_v15 }
 0x94b   :  { %16558 = vmatprep.subr.mxu0 %v17357_v15 }
 0x94d   :  { %16551 = vmatmul.mubr.f32.vlgmr.msra.gmra.mrb[26].mxu1 %v12693_v47 }
 0x94e   :  { %16584 = vmatpush3.msra.mxu1 %v18112_v38  ;;  %16585 = vmatprep.mubr.msk.f32.mxu1 %vm17356_vm0, %v17357_v15 }
 0x94f   :  { %16588 = vmatprep.subr.mxu1 %v17357_v15 }
 0x9e7   :  { %v11713_v14 = vpop.f32.mrb[24].mxu0 }
 0x9e8   :  { %v13074_v18 = vsel %vm1991_vm2, %v11713_v14, 0  ;;  %v16462_v22 = vpop.f32.mrb[25].mxu0 }
 0x9e9   :  { %v13142_v37 = vand.u32 4294901760, %v13074_v18 }
 0x9eb   :  { %v13143_v27 = vsub.f32 %v13074_v18, %v13142_v37  ;;  %v12165_v53 = vpop.f32.mrb[24].mxu1 }
 0x9ec   :  { %v13523_v54 = vsel %vm1991_vm2, %v12165_v53, 0  ;;  %v16492_v50 = vpop.f32.mrb[25].mxu1 }
 0x9ed   :  { %v13144_v62 = vand.u32 4294901760, %v13143_v27  ;;  %v13591_v40 = vand.u32 4294901760, %v13523_v54 }
 0x9ef   :  { %v13145_v3 = vsub.f32 %v13143_v27, %v13144_v62  ;;  %v13592_v17 = vsub.f32 %v13523_v54, %v13591_v40 }
 0x9f1   :  { %v13146_v20 = vand.u32 4294901760, %v13145_v3  ;;  %v13593_v21 = vand.u32 4294901760, %v13592_v17 }
 0x9f3   :  { %v13594_v24 = vsub.f32 %v13592_v17, %v13593_v21  ;;  %16556 = vmatmul.mubr.f32.vlgmr.msra.gmra.mrb[28].mxu0 %v13146_v20 }
 0x9f4   :  { %16559 = vmatpush3.msra.mxu0 %v18138_v55  ;;  %16560 = vmatprep.mubr.msk.f32.mxu0 %vm17356_vm0, %v17357_v15 }
 0x9f5   :  { %v13595_v57 = vand.u32 4294901760, %v13594_v24  ;;  %16563 = vmatprep.subr.mxu0 %v17357_v15 }
 0x9f7   :  { %16586 = vmatmul.mubr.f32.vlgmr.msra.gmra.mrb[28].mxu1 %v13595_v57 }
 0x9f8   :  { %16589 = vmatpush3.msra.mxu1 %v18145_v42  ;;  %16590 = vmatprep.mubr.msk.f32.mxu1 %vm17356_vm0, %v17357_v15 }
 0x9f9   :  { %16593 = vmatprep.subr.mxu1 %v17357_v15 }
 0x9fb   :  { %16561 = vmatmul.mubr.f32.vlgmr.msra.gmra.mrb[28].mxu0 %v13142_v37 }
 0x9fc   :  { %16564 = vmatpush3.msra.mxu0 %v18117_v39  ;;  %16565 = vmatprep.mubr.msk.f32.mxu0 %vm17356_vm0, %v17357_v15 }
 0x9fd   :  { %16568 = vmatprep.subr.mxu0 %v17357_v15 }
 0x9ff   :  { %16591 = vmatmul.mubr.f32.vlgmr.msra.gmra.mrb[28].mxu1 %v13591_v40 }
 0xa00   :  { %16594 = vmatpush3.msra.mxu1 %v18124_v13  ;;  %16595 = vmatprep.mubr.msk.f32.mxu1 %vm17356_vm0, %v17357_v15 }
 0xa01   :  { %16598 = vmatprep.subr.mxu1 %v17357_v15 }
 0xa03   :  { %16566 = vmatmul.mubr.f32.vlgmr.msra.gmra.mrb[28].mxu0 %v13143_v27 }
 0xa04   :  { %16569 = vmatpush3.msra.mxu0 %v18105_v11  ;;  %16570 = vmatprep.mubr.msk.f32.mxu0 %vm17356_vm0, %v17357_v15 }
 0xa05   :  { %16573 = vmatprep.subr.mxu0 %v17357_v15 }
 0xa07   :  { %16596 = vmatmul.mubr.f32.vlgmr.msra.gmra.mrb[28].mxu1 %v13592_v17 }
 0xa08   :  { %16599 = vmatpush3.msra.mxu1 %v18112_v38  ;;  %16600 = vmatprep.mubr.msk.f32.mxu1 %vm17356_vm0, %v17357_v15 }
 0xa09   :  { %16603 = vmatprep.subr.mxu1 %v17357_v15 }
 0xa0b   :  { %16571 = vmatmul.mubr.f32.vlgmr.msra.gmra.mrb[28].mxu0 %v13144_v62 }
 0xa0c   :  { %16574 = vmatpush3.msra.mxu0 %v18121_v26  ;;  %16575 = vmatprep.mubr.msk.f32.mxu0 %vm17356_vm0, %v17357_v15 }
 0xa0d   :  { %16578 = vmatprep.subr.mxu0 %v17357_v15 }
 0xa0f   :  { %16601 = vmatmul.mubr.f32.vlgmr.msra.gmra.mrb[28].mxu1 %v13593_v21 }
 0xa10   :  { %16604 = vmatpush3.msra.mxu1 %v18133_v45  ;;  %16605 = vmatprep.mubr.msk.f32.mxu1 %vm17356_vm0, %v17357_v15 }
 0xa11   :  { %16608 = vmatprep.subr.mxu1 %v17357_v15 }
 0xa13   :  { %16576 = vmatmul.mubr.f32.vlgmr.msra.gmra.mrb[28].mxu0 %v13142_v37 }
 0xa14   :  { %16579 = vmatpush3.msra.mxu0 %v18105_v11  ;;  %16580 = vmatprep.mubr.msk.f32.mxu0 %vm17356_vm0, %v17357_v15 }
 0xa15   :  { %16613 = vmatprep.subr.mxu0 %v17357_v15 }
 0xa17   :  { %16606 = vmatmul.mubr.f32.vlgmr.msra.gmra.mrb[28].mxu1 %v13591_v40 }
 0xa18   :  { %16609 = vmatpush3.msra.mxu1 %v18112_v38  ;;  %16610 = vmatprep.mubr.msk.f32.mxu1 %vm17356_vm0, %v17357_v15 }
 0xa19   :  { %16643 = vmatprep.subr.mxu1 %v17357_v15 }
 0xa1b   :  { %16581 = vmatmul.mubr.f32.vlgmr.msra.gmra.mrb[28].mxu0 %v13142_v37 }
 0xa1c   :  { %v12617_v39 = vpop.f32.mrb[26].mxu0  ;;  %16614 = vmatpush3.msra.mxu0 %v18186_v63  ;;  %16615 = vmatprep.mubr.msk.f32.mxu0 %vm17356_vm0, %v17357_v15 }
 0xa1d   :  { %v13972_v11 = vsel %vm1991_vm2, %v12617_v39, 0  ;;  %v16522_v26 = vpop.f32.mrb[27].mxu0  ;;  %16618 = vmatprep.subr.mxu0 %v17357_v15 }
 0xa1e   :  { %v14040_v13 = vand.u32 4294901760, %v13972_v11 }
 0xa1f   :  { %16611 = vmatmul.mubr.f32.vlgmr.msra.gmra.mrb[28].mxu1 %v13591_v40 }
 0xa20   :  { %v14041_v38 = vsub.f32 %v13972_v11, %v14040_v13  ;;  %v13069_v45 = vpop.f32.mrb[26].mxu1  ;;  %16644 = vmatpush3.msra.mxu1 %v18196_v43  ;;  %16645 = vmatprep.mubr.msk.f32.mxu1 %vm17356_vm0, %v17357_v15 }
 0xa21   :  { %v14421_v55 = vsel %vm1991_vm2, %v13069_v45, 0  ;;  %v16552_v42 = vpop.f32.mrb[27].mxu1  ;;  %16648 = vmatprep.subr.mxu1 %v17357_v15 }
 0xa22   :  { %v14042_v58 = vand.u32 4294901760, %v14041_v38  ;;  %v14489_v60 = vand.u32 4294901760, %v14421_v55 }
 0xa24   :  { %v14043_v0 = vsub.f32 %v14041_v38, %v14042_v58  ;;  %v14490_v1 = vsub.f32 %v14421_v55, %v14489_v60 }
 0xa26   :  { %v14044_v2 = vand.u32 4294901760, %v14043_v0  ;;  %v14491_v4 = vand.u32 4294901760, %v14490_v1 }
 0xa28   :  { %v14492_v5 = vsub.f32 %v14490_v1, %v14491_v4  ;;  %16616 = vmatmul.mubr.f32.vlgmr.msra.gmra.mrb[30].mxu0 %v14044_v2 }
 0xa29   :  { %16619 = vmatpush3.msra.mxu0 %v18227_v41  ;;  %16620 = vmatprep.mubr.msk.f32.mxu0 %vm17356_vm0, %v17357_v15 }
 0xa2a   :  { %v14493_v6 = vand.u32 4294901760, %v14492_v5  ;;  %16623 = vmatprep.subr.mxu0 %v17357_v15 }
 0xa2c   :  { %16646 = vmatmul.mubr.f32.vlgmr.msra.gmra.mrb[30].mxu1 %v14493_v6 }
 0xa2d   :  { %16649 = vmatpush3.msra.mxu1 %v18234_v49  ;;  %16650 = vmatprep.mubr.msk.f32.mxu1 %vm17356_vm0, %v17357_v15 }
 0xa2e   :  { %16653 = vmatprep.subr.mxu1 %v17357_v15 }
 0xa30   :  { %16621 = vmatmul.mubr.f32.vlgmr.msra.gmra.mrb[30].mxu0 %v14040_v13 }
 0xa31   :  { %16624 = vmatpush3.msra.mxu0 %v18199_v10  ;;  %16625 = vmatprep.mubr.msk.f32.mxu0 %vm17356_vm0, %v17357_v15 }
 0xa32   :  { %16628 = vmatprep.subr.mxu0 %v17357_v15 }
 0xa34   :  { %16651 = vmatmul.mubr.f32.vlgmr.msra.gmra.mrb[30].mxu1 %v14489_v60 }
 0xa35   :  { %16654 = vmatpush3.msra.mxu1 %v18211_v61  ;;  %16655 = vmatprep.mubr.msk.f32.mxu1 %vm17356_vm0, %v17357_v15 }
 0xa36   :  { %16658 = vmatprep.subr.mxu1 %v17357_v15 }
 0xa38   :  { %16626 = vmatmul.mubr.f32.vlgmr.msra.gmra.mrb[30].mxu0 %v14041_v38 }
 0xa39   :  { %16629 = vmatpush3.msra.mxu0 %v18186_v63  ;;  %16630 = vmatprep.mubr.msk.f32.mxu0 %vm17356_vm0, %v17357_v15 }
 0xa3a   :  { %16633 = vmatprep.subr.mxu0 %v17357_v15 }
 0xa3c   :  { %16656 = vmatmul.mubr.f32.vlgmr.msra.gmra.mrb[30].mxu1 %v14490_v1 }
 0xa3d   :  { %16659 = vmatpush3.msra.mxu1 %v18196_v43  ;;  %16660 = vmatprep.mubr.msk.f32.mxu1 %vm17356_vm0, %v17357_v15 }
 0xa3e   :  { %16663 = vmatprep.subr.mxu1 %v17357_v15 }
 0xa40   :  { %16631 = vmatmul.mubr.f32.vlgmr.msra.gmra.mrb[30].mxu0 %v14042_v58 }
 0xa41   :  { %16634 = vmatpush3.msra.mxu0 %v18208_v35  ;;  %16635 = vmatprep.mubr.msk.f32.mxu0 %vm17356_vm0, %v17357_v15 }
 0xa42   :  { %16638 = vmatprep.subr.mxu0 %v17357_v15 }
 0xa44   :  { %16661 = vmatmul.mubr.f32.vlgmr.msra.gmra.mrb[30].mxu1 %v14491_v4 }
 0xa45   :  { %16664 = vmatpush3.msra.mxu1 %v18225_v52  ;;  %16665 = vmatprep.mubr.msk.f32.mxu1 %vm17356_vm0, %v17357_v15 }
 0xa46   :  { %16668 = vmatprep.subr.mxu1 %v17357_v15 }
 0xa48   :  { %16636 = vmatmul.mubr.f32.vlgmr.msra.gmra.mrb[30].mxu0 %v14040_v13 }
 0xa49   :  { %16639 = vmatpush3.msra.mxu0 %v18186_v63  ;;  %16640 = vmatprep.mubr.msk.f32.mxu0 %vm17356_vm0, %v17357_v15 }
 0xa4c   :  { %16666 = vmatmul.mubr.f32.vlgmr.msra.gmra.mrb[30].mxu1 %v14489_v60 }
 0xa4d   :  { %16669 = vmatpush3.msra.mxu1 %v18196_v43  ;;  %16670 = vmatprep.mubr.msk.f32.mxu1 %vm17356_vm0, %v17357_v15 }
 0xa50   :  { %16641 = vmatmul.mubr.f32.vlgmr.msra.gmra.mrb[30].mxu0 %v14040_v13 }
 0xa54   :  { %16671 = vmatmul.mubr.f32.vlgmr.msra.gmra.mrb[30].mxu1 %v14489_v60 }
 0xaee   :  { %v13518_v10 = vpop.f32.mrb[28].mxu0 }
 0xaef   :  { %v16582_v35 = vpop.f32.mrb[29].mxu0  ;;  %v14869_v52 = vsel %vm44_vm1, %v13518_v10, 0.0 }
 0xaf2   :  { %v13967_v61 = vpop.f32.mrb[28].mxu1 }
 0xaf3   :  { %v14870_v41 = vsel %vm44_vm1, %v13967_v61, 0.0  ;;  %v16612_v49 = vpop.f32.mrb[29].mxu1 }
 0xaf4   :  { %v14871_v63 = vadd.f32 %v14870_v41, %v14869_v52 }
 0xb23   :  { %v14416_v9 = vpop.f32.mrb[30].mxu0 }
 0xb24   :  { %v14872_v12 = vsel %vm44_vm1, %v14416_v9, 0.0  ;;  %v16642_v19 = vpop.f32.mrb[31].mxu0 }
 0xb25   :  { %v14873_v51 = vadd.f32 %v14872_v12, %v14871_v63 }
 0xb27   :  { %v14865_v43 = vpop.f32.mrb[30].mxu1 }
 0xb28   :  { %v14874_v8 = vsel %vm44_vm1, %v14865_v43, 0.0  ;;  %v16672_v15 = vpop.f32.mrb[31].mxu1 }
 0xb29   :  { %v14875_v23 = vadd.f32 %v14874_v8, %v14873_v51 }
 0xb2b   :  { %v14876_v33 = vadd.f32 %v17330_v29, %v14875_v23 }
 0xb2d   :  { %14878 = vst.msk [vmem:[#allocation2 + $0x8] sm:$0xff] %vm44_vm1, %v14876_v33 }
 0xb2e   :  { %17342 = shalt.err (!%p17339_p4)
}
 0xb2f   :  { %s17343_s23 = scalar_lea.hbm %s18854_s5, 256 }
 0xb30   :  { %p17344_p5 = scmp.ne.s32.totalorder %s18854_s5, %s17343_s23  ;;  %p17347_p6 = scmp.lt.u32.totalorder %s17343_s23, %s18854_s5 }
 0xb32   :  { %p17349_p7 = pnand %p17347_p6, %p17344_p5 }
 0xb34   :  { %17352 = shalt.err (!%p17349_p7)
}
 0xb35   :  { %s17361_s1 = smov 128   ;;  %s17362_s27 = smov 8  }
 0xb36   :  { %14890 = dma.vmem_to_hbm [thread:$0]  %s14885_s17, 256, %s18854_s5, [#allocation3], %s17361_s1, %s17361_s1, %s17362_s27  }
 0xb37   :  { %17353 = dma.done.wait [#allocation3], 256  }
 0xb38   :  { %17354 = vsyncadd [#allocation3], 4294967040 }
 0xb39   :  { %14894 = vsyncpa [#allocation3], 1 }

</bundles_post_ra>
